<compile_context>
chip_gen: v7x
topology: tpu7x:2x2x1
jax: 0.10.0
libtpu: 0.0.40
codegen_flags: <defaults>
</compile_context>

<pallas_src>
import functools

import jax
import jax.numpy as jnp
from jax.experimental import pallas as pl
from jax.experimental.pallas import tpu as pltpu


def _layernorm_c(x, gamma, beta):
    """WithBias LayerNorm over the channel (sublane) dim.  x: (C, HW)."""
    mu = jnp.mean(x, axis=0, keepdims=True)
    xc = x - mu
    var = jnp.mean(xc * xc, axis=0, keepdims=True)
    return xc * jax.lax.rsqrt(var + 1e-5) * gamma + beta


def _l2norm_rows(t):
    """L2-normalize each row over the lane (spatial) dim (F.normalize)."""
    ss = jnp.sum(t * t, axis=-1, keepdims=True)
    return t * jax.lax.rsqrt(jnp.maximum(ss, 1e-24))


def _mix_channels(wmat, x):
    """y[o, :] = sum_i wmat[o, i] * x[i, :].  Tiny cin -> VPU broadcast FMAs."""
    cout, cin = wmat.shape
    acc = wmat[:, 0:1] * x[0:1, :]
    for ci in range(1, cin):
        acc = acc + wmat[:, ci:ci + 1] * x[ci:ci + 1, :]
    return acc


def _dwconv3x3_roll(x, taps, *, w, mask_cl, mask_cr, mask_rt, mask_rb):
    """Depthwise 3x3, stride 1, zero padding 1, on a flat (R, H*W) slab.

    Each tap is a circular lane rotation (pltpu.roll, XLU slot) of a
    column-pre-masked copy of the slab; vertically out-of-bounds rows are
    removed with one destination mask per kh-group.

    x:        (R, HW)
    taps:     (R, 9) per-row taps, column index = kh*3 + kw
    mask_cl:  (1, HW), 0 where col == W-1  (source pre-mask for dw = -1 taps)
    mask_cr:  (1, HW), 0 where col == 0    (source pre-mask for dw = +1 taps)
    mask_rt:  (1, HW), 0 where row == 0    (dest mask for dh = -1 taps)
    mask_rb:  (1, HW), 0 where row == H-1  (dest mask for dh = +1 taps)
    """
    hw = x.shape[-1]
    xs = (x * mask_cl, x, x * mask_cr)        # pre-masked source per dw tap
    acc = None
    for kh in range(3):
        dh = kh - 1
        row_acc = None
        for kw in range(3):
            dw = kw - 1
            d = dh * w + dw                   # flat source offset of this tap
            src = xs[kw]
            # shifted[p] = src[(p + d) mod HW]; wrapped garbage is masked out.
            shifted = pltpu.roll(src, (-d) % hw, 1) if d != 0 else src
            term = shifted * taps[:, kh * 3 + kw:kh * 3 + kw + 1]
            row_acc = term if row_acc is None else row_acc + term
        if dh == -1:
            row_acc = row_acc * mask_rt
        elif dh == 1:
            row_acc = row_acc * mask_rb
        acc = row_acc if acc is None else acc + row_acc
    return acc


def _atten_kernel(pre_ref, cur_ref, consts_ref, wmix_ref, wtaps_ref,
                  masks_ref, o_ref, slab_scr, *, c, w, b_blk):
    f32 = jnp.float32

    # ---- unpack the packed constants (single small DMAs) ----
    consts = consts_ref[...]                       # (11c, 1)
    g1 = consts[0:c]
    b1 = consts[c:2 * c]
    g2 = consts[2 * c:3 * c]
    b2 = consts[3 * c:4 * c]
    bq1 = consts[4 * c:5 * c]
    bkv1 = consts[5 * c:7 * c]
    bqd = consts[7 * c:8 * c]
    bkvd = consts[8 * c:10 * c]
    bo = consts[10 * c:11 * c]

    wmix = wmix_ref[...]                           # (4c, c)
    wq1 = wmix[0:c]
    wkv1 = wmix[c:3 * c]
    wo = wmix[3 * c:4 * c]

    masks = masks_ref[...]                         # (4, hw)
    mask_cl = masks[0:1]
    mask_cr = masks[1:2]
    mask_rt = masks[2:3]
    mask_rb = masks[3:4]

    # ---- LayerNorms + 1x1 mixes; stage results into one stacked slab ----
    # Slab row layout (grouped so the big kv stores are sublane-tile aligned):
    #   [ q1(batch 0) .. q1(batch b_blk-1) | kv1(batch 0) .. kv1(b_blk-1) ]
    kv_off = b_blk * c
    for b in range(b_blk):
        pre_ln = _layernorm_c(pre_ref[b], g1, b1)
        cur_ln = _layernorm_c(cur_ref[b], g2, b2)
        slab_scr[b * c:(b + 1) * c, :] = _mix_channels(wq1, cur_ln) + bq1
        slab_scr[kv_off + 2 * b * c:kv_off + 2 * (b + 1) * c, :] = (
            _mix_channels(wkv1, pre_ln) + bkv1)

    # ---- single fused depthwise 3x3 over all batches / q / k / v rows ----
    dw = _dwconv3x3_roll(slab_scr[...], wtaps_ref[...], w=w,
                         mask_cl=mask_cl, mask_cr=mask_cr,
                         mask_rt=mask_rt, mask_rb=mask_rb)

    # ---- per-batch attention, output 1x1 and residual ----
    for b in range(b_blk):
        q = dw[b * c:(b + 1) * c] + bqd
        kvb = dw[kv_off + 2 * b * c:kv_off + 2 * (b + 1) * c] + bkvd
        k = kvb[0:c]
        v = kvb[c:2 * c]

        qn = _l2norm_rows(q)
        kn = _l2norm_rows(k)

        if c <= 8:
            # Tiny C: (c, c) scores on the VPU/XLU; never materialize the
            # score matrix (avoids kn transpose + MXU FIFO drain at this size).
            s_cols = [jnp.sum(qn * kn[j:j + 1, :], axis=-1, keepdims=True)
                      for j in range(c)]                       # c x (c, 1)
            m = s_cols[0]
            for j in range(1, c):
                m = jnp.maximum(m, s_cols[j])
            e_cols = [jnp.exp(s - m) for s in s_cols]
            denom = e_cols[0]
            for j in range(1, c):
                denom = denom + e_cols[j]
            inv = pl.reciprocal(denom, approx=True)            # EUP
            out = (e_cols[0] * inv) * v[0:1, :]
            for j in range(1, c):
                out = out + (e_cols[j] * inv) * v[j:j + 1, :]
        else:
            # Larger C: MXU path (K = HW contraction, then (c,c) @ (c,hw)).
            att = jax.lax.dot_general(qn, kn, (((1,), (1,)), ((), ())),
                                      preferred_element_type=f32)
            att = att - jnp.max(att, axis=-1, keepdims=True)
            e = jnp.exp(att)
            p = e * pl.reciprocal(jnp.sum(e, axis=-1, keepdims=True),
                                  approx=True)
            out = jax.lax.dot_general(p, v, (((1,), (0,)), ((), ())),
                                      preferred_element_type=f32)

        y = _mix_channels(wo, out) + bo + cur_ref[b]
        o_ref[b] = y.astype(o_ref.dtype)


def atten_forward(pre, cur, params):
    """Atten.forward.  pre, cur: (B, C, H, W) float32 (NCHW, as in PyTorch)."""
    (g1, b1, g2, b2, wq1, bq1, wqd, bqd,
     wkv1, bkv1, wkvd, bkvd, wo, bo) = params
    B, C, H, W = pre.shape
    HW = H * W
    f32 = jnp.float32

    # Two batch elements per grid step when B divides evenly: 2*C channels
    # fill the f32 sublane tile and the (serial on v5e/v6e) grid is halved.
    b_blk = 2 if B % 2 == 0 else 1

    pre_f = pre.reshape(B, C, HW)
    cur_f = cur.reshape(B, C, HW)

    def flat(v):
        return v.reshape(-1).astype(f32)

    # All per-channel vectors packed into a single (11C, 1) column.
    consts = jnp.concatenate([
        flat(g1), flat(b1), flat(g2), flat(b2),
        flat(bq1), flat(bkv1), flat(bqd), flat(bkvd), flat(bo),
    ]).reshape(-1, 1)

    # All three 1x1 weight matrices packed into a single (4C, C) matrix.
    wmix = jnp.concatenate([wq1.reshape(C, C), wkv1.reshape(2 * C, C),
                            wo.reshape(C, C)], axis=0).astype(f32)

    # Depthwise taps for the stacked slab: [wqd x b_blk ; wkvd x b_blk].
    wqd9 = wqd.reshape(C, 9).astype(f32)
    wkvd9 = wkvd.reshape(2 * C, 9).astype(f32)
    wtaps = jnp.concatenate([jnp.tile(wqd9, (b_blk, 1)),
                             jnp.tile(wkvd9, (b_blk, 1))], axis=0)

    # Boundary-validity masks for the rolled depthwise taps, packed into ONE
    # (4, HW) array (kept host-side: one tiny DMA, no in-kernel integer
    # div/mod needed).
    lane = jnp.arange(HW, dtype=jnp.int32)
    col = lane % W
    row = lane // W
    masks = jnp.stack([(col != W - 1), (col != 0),
                       (row != 0), (row != H - 1)]).astype(f32)

    batch_spec = pl.BlockSpec((b_blk, C, HW), lambda n: (n, 0, 0))

    def const_spec(a):
        return pl.BlockSpec(a.shape, lambda n: (0,) * a.ndim)

    kern = functools.partial(_atten_kernel, c=C, w=W, b_blk=b_blk)
    out = pl.pallas_call(
        kern,
        out_shape=jax.ShapeDtypeStruct((B, C, HW), pre.dtype),
        grid=(B // b_blk,),
        in_specs=[batch_spec, batch_spec,
                  const_spec(consts), const_spec(wmix),
                  const_spec(wtaps), const_spec(masks)],
        out_specs=batch_spec,
        scratch_shapes=[pltpu.VMEM((b_blk * 3 * C, HW), jnp.float32)],
        compiler_params=pltpu.CompilerParams(
            dimension_semantics=("parallel",)),
    )(pre_f, cur_f, consts, wmix, wtaps, masks)
    return out.reshape(B, C, H, W)


# ---------------- pure-JAX reference (PyTorch semantics) ----------------
def _ref_atten(pre, cur, params):
    (g1, b1, g2, b2, wq1, bq1, wqd, bqd,
     wkv1, bkv1, wkvd, bkvd, wo, bo) = params
    B, C, H, W = pre.shape
    hp = jax.lax.Precision.HIGHEST

    def ln(x, g, bb):
        mu = jnp.mean(x, axis=1, keepdims=True)
        var = jnp.mean((x - mu) ** 2, axis=1, keepdims=True)
        return ((x - mu) / jnp.sqrt(var + 1e-5)
                * g.reshape(1, C, 1, 1) + bb.reshape(1, C, 1, 1))

    def conv1x1(x, wmat, bias):
        y = jnp.einsum("oi,bihw->bohw", wmat, x, precision=hp)
        return y + bias.reshape(1, -1, 1, 1)

    def dwconv3(x, wd, bias):
        Cc = x.shape[1]
        y = jax.lax.conv_general_dilated(
            x, wd.reshape(Cc, 1, 3, 3), window_strides=(1, 1),
            padding=((1, 1), (1, 1)),
            dimension_numbers=("NCHW", "OIHW", "NCHW"),
            feature_group_count=Cc, precision=hp)
        return y + bias.reshape(1, Cc, 1, 1)

    pre_ln = ln(pre, g1, b1)
    cur_ln = ln(cur, g2, b2)
    q = dwconv3(conv1x1(cur_ln, wq1, bq1), wqd, bqd).reshape(B, C, H * W)
    kv = dwconv3(conv1x1(pre_ln, wkv1, bkv1), wkvd, bkvd)
    k = kv[:, :C].reshape(B, C, H * W)
    v = kv[:, C:].reshape(B, C, H * W)

    def l2n(t):
        n = jnp.sqrt(jnp.sum(t * t, axis=-1, keepdims=True))
        return t / jnp.maximum(n, 1e-12)

    qn, kn = l2n(q), l2n(k)
    att = jax.nn.softmax(jnp.einsum("bcp,bdp->bcd", qn, kn, precision=hp),
                         axis=-1)
    out = jnp.einsum("bcd,bdp->bcp", att, v, precision=hp).reshape(B, C, H, W)
    return conv1x1(out, wo, bo) + cur


if __name__ == "__main__":
    key = jax.random.PRNGKey(0)
    B, C, H, W = 2, 4, 16, 16          # torch NCHW shapes: pre/cur (2,4,16,16)
    ks = jax.random.split(key, 16)

    pre = jax.random.normal(ks[0], (B, C, H, W), jnp.float32)
    cur = jax.random.normal(ks[1], (B, C, H, W), jnp.float32)

    def unif(k, shape, fan_in):
        bnd = 1.0 / (fan_in ** 0.5)
        return jax.random.uniform(k, shape, jnp.float32, -bnd, bnd)

    g1 = 1.0 + 0.1 * jax.random.normal(ks[2], (C,), jnp.float32)
    b1 = 0.1 * jax.random.normal(ks[3], (C,), jnp.float32)
    g2 = 1.0 + 0.1 * jax.random.normal(ks[4], (C,), jnp.float32)
    b2 = 0.1 * jax.random.normal(ks[5], (C,), jnp.float32)

    wq1 = unif(ks[6], (C, C), C);            bq1 = unif(ks[7], (C,), C)
    wqd = unif(ks[8], (C, 3, 3), 9);         bqd = unif(ks[9], (C,), 9)
    wkv1 = unif(ks[10], (2 * C, C), C);      bkv1 = unif(ks[11], (2 * C,), C)
    wkvd = unif(ks[12], (2 * C, 3, 3), 9);   bkvd = unif(ks[13], (2 * C,), 9)
    wo = unif(ks[14], (C, C), C);            bo = unif(ks[15], (C,), C)

    params = (g1, b1, g2, b2, wq1, bq1, wqd, bqd,
              wkv1, bkv1, wkvd, bkvd, wo, bo)

    fwd = jax.jit(lambda a, b: atten_forward(a, b, params))
    out = jax.block_until_ready(fwd(pre, cur))
    assert out.shape == (B, C, H, W), out.shape

    ref = _ref_atten(pre, cur, params)
    err = float(jnp.max(jnp.abs(out - ref)))
    assert jnp.allclose(out, ref, atol=1e-2, rtol=1e-2), err

    print("KERNEL_OK")
</pallas_src>

<mosaic_0001>
module attributes {stable_mosaic.version = 11 : i64} {
  func.func @_atten_kernel(%arg0: i32, %arg1: memref<2x4x256xf32, #tpu.memory_space<vmem>>, %arg2: memref<2x4x256xf32, #tpu.memory_space<vmem>>, %arg3: memref<44x1xf32, #tpu.memory_space<vmem>>, %arg4: memref<16x4xf32, #tpu.memory_space<vmem>>, %arg5: memref<24x9xf32, #tpu.memory_space<vmem>>, %arg6: memref<4x256xf32, #tpu.memory_space<vmem>>, %arg7: memref<2x4x256xf32, #tpu.memory_space<vmem>>, %arg8: memref<24x256xf32, #tpu.memory_space<vmem>>) attributes {dimension_semantics = [#tpu.dimension_semantics<parallel>], iteration_bounds = array<i64: 1>, scalar_prefetch = 0 : i64, scratch_operands = 1 : i64, tpu.core_type = #tpu.core_type<tc>, window_params = [{transform_indices = @transform_0, window_bounds = array<i64: 2, 4, 256>}, {transform_indices = @transform_1, window_bounds = array<i64: 2, 4, 256>}, {pipeline_mode = #tpu.pipeline_mode<synchronous>, transform_indices = @transform_2, window_bounds = array<i64: 44, 1>}, {pipeline_mode = #tpu.pipeline_mode<synchronous>, transform_indices = @transform_3, window_bounds = array<i64: 16, 4>}, {pipeline_mode = #tpu.pipeline_mode<synchronous>, transform_indices = @transform_4, window_bounds = array<i64: 24, 9>}, {pipeline_mode = #tpu.pipeline_mode<synchronous>, transform_indices = @transform_5, window_bounds = array<i64: 4, 256>}, {transform_indices = @transform_6, window_bounds = array<i64: 2, 4, 256>}]} {
    %c0 = arith.constant 0 : index
    %c0_0 = arith.constant 0 : index
    %0 = vector.load %arg3[%c0, %c0_0] : memref<44x1xf32, #tpu.memory_space<vmem>>, vector<44x1xf32>
    %1 = vector.extract_strided_slice %0 {offsets = [0, 0], sizes = [4, 1], strides = [1, 1]} : vector<44x1xf32> to vector<4x1xf32>
    %2 = vector.extract_strided_slice %0 {offsets = [4, 0], sizes = [4, 1], strides = [1, 1]} : vector<44x1xf32> to vector<4x1xf32>
    %3 = vector.extract_strided_slice %0 {offsets = [8, 0], sizes = [4, 1], strides = [1, 1]} : vector<44x1xf32> to vector<4x1xf32>
    %4 = vector.extract_strided_slice %0 {offsets = [12, 0], sizes = [4, 1], strides = [1, 1]} : vector<44x1xf32> to vector<4x1xf32>
    %5 = vector.extract_strided_slice %0 {offsets = [16, 0], sizes = [4, 1], strides = [1, 1]} : vector<44x1xf32> to vector<4x1xf32>
    %6 = vector.extract_strided_slice %0 {offsets = [20, 0], sizes = [8, 1], strides = [1, 1]} : vector<44x1xf32> to vector<8x1xf32>
    %7 = vector.extract_strided_slice %0 {offsets = [28, 0], sizes = [4, 1], strides = [1, 1]} : vector<44x1xf32> to vector<4x1xf32>
    %8 = vector.extract_strided_slice %0 {offsets = [32, 0], sizes = [8, 1], strides = [1, 1]} : vector<44x1xf32> to vector<8x1xf32>
    %9 = vector.extract_strided_slice %0 {offsets = [40, 0], sizes = [4, 1], strides = [1, 1]} : vector<44x1xf32> to vector<4x1xf32>
    %c0_1 = arith.constant 0 : index
    %c0_2 = arith.constant 0 : index
    %10 = vector.load %arg4[%c0_1, %c0_2] : memref<16x4xf32, #tpu.memory_space<vmem>>, vector<16x4xf32>
    %11 = vector.extract_strided_slice %10 {offsets = [0, 0], sizes = [4, 4], strides = [1, 1]} : vector<16x4xf32> to vector<4x4xf32>
    %12 = vector.extract_strided_slice %10 {offsets = [4, 0], sizes = [8, 4], strides = [1, 1]} : vector<16x4xf32> to vector<8x4xf32>
    %13 = vector.extract_strided_slice %10 {offsets = [12, 0], sizes = [4, 4], strides = [1, 1]} : vector<16x4xf32> to vector<4x4xf32>
    %c0_3 = arith.constant 0 : index
    %c0_4 = arith.constant 0 : index
    %14 = vector.load %arg6[%c0_3, %c0_4] : memref<4x256xf32, #tpu.memory_space<vmem>>, vector<4x256xf32>
    %15 = vector.extract_strided_slice %14 {offsets = [0, 0], sizes = [1, 256], strides = [1, 1]} : vector<4x256xf32> to vector<1x256xf32>
    %16 = vector.extract_strided_slice %14 {offsets = [1, 0], sizes = [1, 256], strides = [1, 1]} : vector<4x256xf32> to vector<1x256xf32>
    %17 = vector.extract_strided_slice %14 {offsets = [2, 0], sizes = [1, 256], strides = [1, 1]} : vector<4x256xf32> to vector<1x256xf32>
    %18 = vector.extract_strided_slice %14 {offsets = [3, 0], sizes = [1, 256], strides = [1, 1]} : vector<4x256xf32> to vector<1x256xf32>
    %c0_5 = arith.constant 0 : index
    %c0_6 = arith.constant 0 : index
    %c0_7 = arith.constant 0 : index
    %19 = vector.load %arg1[%c0_5, %c0_6, %c0_7] : memref<2x4x256xf32, #tpu.memory_space<vmem>>, vector<1x4x256xf32>
    %20 = vector.shape_cast %19 : vector<1x4x256xf32> to vector<4x256xf32>
    %cst = arith.constant dense<0.000000e+00> : vector<256xf32>
    %21 = vector.multi_reduction <add>, %20, %cst [0] : vector<4x256xf32> to vector<256xf32>
    %22 = vector.shape_cast %21 : vector<256xf32> to vector<1x256xf32>
    %cst_8 = arith.constant 4.000000e+00 : f32
    %23 = vector.broadcast %cst_8 : f32 to vector<1x256xf32>
    %24 = arith.divf %22, %23 : vector<1x256xf32>
    %25 = vector.broadcast %24 : vector<1x256xf32> to vector<4x256xf32>
    %26 = arith.subf %20, %25 : vector<4x256xf32>
    %27 = arith.mulf %26, %26 : vector<4x256xf32>
    %cst_9 = arith.constant dense<0.000000e+00> : vector<256xf32>
    %28 = vector.multi_reduction <add>, %27, %cst_9 [0] : vector<4x256xf32> to vector<256xf32>
    %29 = vector.shape_cast %28 : vector<256xf32> to vector<1x256xf32>
    %cst_10 = arith.constant 4.000000e+00 : f32
    %30 = vector.broadcast %cst_10 : f32 to vector<1x256xf32>
    %31 = arith.divf %29, %30 : vector<1x256xf32>
    %cst_11 = arith.constant 9.99999974E-6 : f32
    %32 = vector.broadcast %cst_11 : f32 to vector<1x256xf32>
    %33 = arith.addf %31, %32 : vector<1x256xf32>
    %34 = math.rsqrt %33 : vector<1x256xf32>
    %35 = vector.broadcast %34 : vector<1x256xf32> to vector<4x256xf32>
    %36 = arith.mulf %26, %35 : vector<4x256xf32>
    %37 = vector.broadcast %1 : vector<4x1xf32> to vector<4x256xf32>
    %38 = arith.mulf %36, %37 : vector<4x256xf32>
    %39 = vector.broadcast %2 : vector<4x1xf32> to vector<4x256xf32>
    %40 = arith.addf %38, %39 : vector<4x256xf32>
    %c0_12 = arith.constant 0 : index
    %c0_13 = arith.constant 0 : index
    %c0_14 = arith.constant 0 : index
    %41 = vector.load %arg2[%c0_12, %c0_13, %c0_14] : memref<2x4x256xf32, #tpu.memory_space<vmem>>, vector<1x4x256xf32>
    %42 = vector.shape_cast %41 : vector<1x4x256xf32> to vector<4x256xf32>
    %cst_15 = arith.constant dense<0.000000e+00> : vector<256xf32>
    %43 = vector.multi_reduction <add>, %42, %cst_15 [0] : vector<4x256xf32> to vector<256xf32>
    %44 = vector.shape_cast %43 : vector<256xf32> to vector<1x256xf32>
    %cst_16 = arith.constant 4.000000e+00 : f32
    %45 = vector.broadcast %cst_16 : f32 to vector<1x256xf32>
    %46 = arith.divf %44, %45 : vector<1x256xf32>
    %47 = vector.broadcast %46 : vector<1x256xf32> to vector<4x256xf32>
    %48 = arith.subf %42, %47 : vector<4x256xf32>
    %49 = arith.mulf %48, %48 : vector<4x256xf32>
    %cst_17 = arith.constant dense<0.000000e+00> : vector<256xf32>
    %50 = vector.multi_reduction <add>, %49, %cst_17 [0] : vector<4x256xf32> to vector<256xf32>
    %51 = vector.shape_cast %50 : vector<256xf32> to vector<1x256xf32>
    %cst_18 = arith.constant 4.000000e+00 : f32
    %52 = vector.broadcast %cst_18 : f32 to vector<1x256xf32>
    %53 = arith.divf %51, %52 : vector<1x256xf32>
    %cst_19 = arith.constant 9.99999974E-6 : f32
    %54 = vector.broadcast %cst_19 : f32 to vector<1x256xf32>
    %55 = arith.addf %53, %54 : vector<1x256xf32>
    %56 = math.rsqrt %55 : vector<1x256xf32>
    %57 = vector.broadcast %56 : vector<1x256xf32> to vector<4x256xf32>
    %58 = arith.mulf %48, %57 : vector<4x256xf32>
    %59 = vector.broadcast %3 : vector<4x1xf32> to vector<4x256xf32>
    %60 = arith.mulf %58, %59 : vector<4x256xf32>
    %61 = vector.broadcast %4 : vector<4x1xf32> to vector<4x256xf32>
    %62 = arith.addf %60, %61 : vector<4x256xf32>
    %63 = vector.extract_strided_slice %11 {offsets = [0, 0], sizes = [4, 1], strides = [1, 1]} : vector<4x4xf32> to vector<4x1xf32>
    %64 = vector.extract_strided_slice %62 {offsets = [0, 0], sizes = [1, 256], strides = [1, 1]} : vector<4x256xf32> to vector<1x256xf32>
    %65 = vector.broadcast %63 : vector<4x1xf32> to vector<4x256xf32>
    %66 = vector.broadcast %64 : vector<1x256xf32> to vector<4x256xf32>
    %67 = arith.mulf %65, %66 : vector<4x256xf32>
    %68 = vector.extract_strided_slice %11 {offsets = [0, 1], sizes = [4, 1], strides = [1, 1]} : vector<4x4xf32> to vector<4x1xf32>
    %69 = vector.extract_strided_slice %62 {offsets = [1, 0], sizes = [1, 256], strides = [1, 1]} : vector<4x256xf32> to vector<1x256xf32>
    %70 = vector.broadcast %68 : vector<4x1xf32> to vector<4x256xf32>
    %71 = vector.broadcast %69 : vector<1x256xf32> to vector<4x256xf32>
    %72 = arith.mulf %70, %71 : vector<4x256xf32>
    %73 = arith.addf %67, %72 : vector<4x256xf32>
    %74 = vector.extract_strided_slice %11 {offsets = [0, 2], sizes = [4, 1], strides = [1, 1]} : vector<4x4xf32> to vector<4x1xf32>
    %75 = vector.extract_strided_slice %62 {offsets = [2, 0], sizes = [1, 256], strides = [1, 1]} : vector<4x256xf32> to vector<1x256xf32>
    %76 = vector.broadcast %74 : vector<4x1xf32> to vector<4x256xf32>
    %77 = vector.broadcast %75 : vector<1x256xf32> to vector<4x256xf32>
    %78 = arith.mulf %76, %77 : vector<4x256xf32>
    %79 = arith.addf %73, %78 : vector<4x256xf32>
    %80 = vector.extract_strided_slice %11 {offsets = [0, 3], sizes = [4, 1], strides = [1, 1]} : vector<4x4xf32> to vector<4x1xf32>
    %81 = vector.extract_strided_slice %62 {offsets = [3, 0], sizes = [1, 256], strides = [1, 1]} : vector<4x256xf32> to vector<1x256xf32>
    %82 = vector.broadcast %80 : vector<4x1xf32> to vector<4x256xf32>
    %83 = vector.broadcast %81 : vector<1x256xf32> to vector<4x256xf32>
    %84 = arith.mulf %82, %83 : vector<4x256xf32>
    %85 = arith.addf %79, %84 : vector<4x256xf32>
    %86 = vector.broadcast %5 : vector<4x1xf32> to vector<4x256xf32>
    %87 = arith.addf %85, %86 : vector<4x256xf32>
    %c0_20 = arith.constant 0 : index
    %c0_21 = arith.constant 0 : index
    %88 = vector.load %arg8[%c0_20, %c0_21] : memref<24x256xf32, #tpu.memory_space<vmem>>, vector<4x256xf32>
    tpu.vector_store %arg8[%c0_20, %c0_21], %87 {strides = array<i32>} : memref<24x256xf32, #tpu.memory_space<vmem>>, vector<4x256xf32>,
    %89 = vector.extract_strided_slice %12 {offsets = [0, 0], sizes = [8, 1], strides = [1, 1]} : vector<8x4xf32> to vector<8x1xf32>
    %90 = vector.extract_strided_slice %40 {offsets = [0, 0], sizes = [1, 256], strides = [1, 1]} : vector<4x256xf32> to vector<1x256xf32>
    %91 = vector.broadcast %89 : vector<8x1xf32> to vector<8x256xf32>
    %92 = vector.broadcast %90 : vector<1x256xf32> to vector<8x256xf32>
    %93 = arith.mulf %91, %92 : vector<8x256xf32>
    %94 = vector.extract_strided_slice %12 {offsets = [0, 1], sizes = [8, 1], strides = [1, 1]} : vector<8x4xf32> to vector<8x1xf32>
    %95 = vector.extract_strided_slice %40 {offsets = [1, 0], sizes = [1, 256], strides = [1, 1]} : vector<4x256xf32> to vector<1x256xf32>
    %96 = vector.broadcast %94 : vector<8x1xf32> to vector<8x256xf32>
    %97 = vector.broadcast %95 : vector<1x256xf32> to vector<8x256xf32>
    %98 = arith.mulf %96, %97 : vector<8x256xf32>
    %99 = arith.addf %93, %98 : vector<8x256xf32>
    %100 = vector.extract_strided_slice %12 {offsets = [0, 2], sizes = [8, 1], strides = [1, 1]} : vector<8x4xf32> to vector<8x1xf32>
    %101 = vector.extract_strided_slice %40 {offsets = [2, 0], sizes = [1, 256], strides = [1, 1]} : vector<4x256xf32> to vector<1x256xf32>
    %102 = vector.broadcast %100 : vector<8x1xf32> to vector<8x256xf32>
    %103 = vector.broadcast %101 : vector<1x256xf32> to vector<8x256xf32>
    %104 = arith.mulf %102, %103 : vector<8x256xf32>
    %105 = arith.addf %99, %104 : vector<8x256xf32>
    %106 = vector.extract_strided_slice %12 {offsets = [0, 3], sizes = [8, 1], strides = [1, 1]} : vector<8x4xf32> to vector<8x1xf32>
    %107 = vector.extract_strided_slice %40 {offsets = [3, 0], sizes = [1, 256], strides = [1, 1]} : vector<4x256xf32> to vector<1x256xf32>
    %108 = vector.broadcast %106 : vector<8x1xf32> to vector<8x256xf32>
    %109 = vector.broadcast %107 : vector<1x256xf32> to vector<8x256xf32>
    %110 = arith.mulf %108, %109 : vector<8x256xf32>
    %111 = arith.addf %105, %110 : vector<8x256xf32>
    %112 = vector.broadcast %6 : vector<8x1xf32> to vector<8x256xf32>
    %113 = arith.addf %111, %112 : vector<8x256xf32>
    %c8 = arith.constant 8 : index
    %c0_22 = arith.constant 0 : index
    %114 = vector.load %arg8[%c8, %c0_22] : memref<24x256xf32, #tpu.memory_space<vmem>>, vector<8x256xf32>
    tpu.vector_store %arg8[%c8, %c0_22], %113 {strides = array<i32>} : memref<24x256xf32, #tpu.memory_space<vmem>>, vector<8x256xf32>,
    %c1 = arith.constant 1 : index
    %c0_23 = arith.constant 0 : index
    %c0_24 = arith.constant 0 : index
    %115 = vector.load %arg1[%c1, %c0_23, %c0_24] : memref<2x4x256xf32, #tpu.memory_space<vmem>>, vector<1x4x256xf32>
    %116 = vector.shape_cast %115 : vector<1x4x256xf32> to vector<4x256xf32>
    %cst_25 = arith.constant dense<0.000000e+00> : vector<256xf32>
    %117 = vector.multi_reduction <add>, %116, %cst_25 [0] : vector<4x256xf32> to vector<256xf32>
    %118 = vector.shape_cast %117 : vector<256xf32> to vector<1x256xf32>
    %cst_26 = arith.constant 4.000000e+00 : f32
    %119 = vector.broadcast %cst_26 : f32 to vector<1x256xf32>
    %120 = arith.divf %118, %119 : vector<1x256xf32>
    %121 = vector.broadcast %120 : vector<1x256xf32> to vector<4x256xf32>
    %122 = arith.subf %116, %121 : vector<4x256xf32>
    %123 = arith.mulf %122, %122 : vector<4x256xf32>
    %cst_27 = arith.constant dense<0.000000e+00> : vector<256xf32>
    %124 = vector.multi_reduction <add>, %123, %cst_27 [0] : vector<4x256xf32> to vector<256xf32>
    %125 = vector.shape_cast %124 : vector<256xf32> to vector<1x256xf32>
    %cst_28 = arith.constant 4.000000e+00 : f32
    %126 = vector.broadcast %cst_28 : f32 to vector<1x256xf32>
    %127 = arith.divf %125, %126 : vector<1x256xf32>
    %cst_29 = arith.constant 9.99999974E-6 : f32
    %128 = vector.broadcast %cst_29 : f32 to vector<1x256xf32>
    %129 = arith.addf %127, %128 : vector<1x256xf32>
    %130 = math.rsqrt %129 : vector<1x256xf32>
    %131 = vector.broadcast %130 : vector<1x256xf32> to vector<4x256xf32>
    %132 = arith.mulf %122, %131 : vector<4x256xf32>
    %133 = vector.broadcast %1 : vector<4x1xf32> to vector<4x256xf32>
    %134 = arith.mulf %132, %133 : vector<4x256xf32>
    %135 = vector.broadcast %2 : vector<4x1xf32> to vector<4x256xf32>
    %136 = arith.addf %134, %135 : vector<4x256xf32>
    %c1_30 = arith.constant 1 : index
    %c0_31 = arith.constant 0 : index
    %c0_32 = arith.constant 0 : index
    %137 = vector.load %arg2[%c1_30, %c0_31, %c0_32] : memref<2x4x256xf32, #tpu.memory_space<vmem>>, vector<1x4x256xf32>
    %138 = vector.shape_cast %137 : vector<1x4x256xf32> to vector<4x256xf32>
    %cst_33 = arith.constant dense<0.000000e+00> : vector<256xf32>
    %139 = vector.multi_reduction <add>, %138, %cst_33 [0] : vector<4x256xf32> to vector<256xf32>
    %140 = vector.shape_cast %139 : vector<256xf32> to vector<1x256xf32>
    %cst_34 = arith.constant 4.000000e+00 : f32
    %141 = vector.broadcast %cst_34 : f32 to vector<1x256xf32>
    %142 = arith.divf %140, %141 : vector<1x256xf32>
    %143 = vector.broadcast %142 : vector<1x256xf32> to vector<4x256xf32>
    %144 = arith.subf %138, %143 : vector<4x256xf32>
    %145 = arith.mulf %144, %144 : vector<4x256xf32>
    %cst_35 = arith.constant dense<0.000000e+00> : vector<256xf32>
    %146 = vector.multi_reduction <add>, %145, %cst_35 [0] : vector<4x256xf32> to vector<256xf32>
    %147 = vector.shape_cast %146 : vector<256xf32> to vector<1x256xf32>
    %cst_36 = arith.constant 4.000000e+00 : f32
    %148 = vector.broadcast %cst_36 : f32 to vector<1x256xf32>
    %149 = arith.divf %147, %148 : vector<1x256xf32>
    %cst_37 = arith.constant 9.99999974E-6 : f32
    %150 = vector.broadcast %cst_37 : f32 to vector<1x256xf32>
    %151 = arith.addf %149, %150 : vector<1x256xf32>
    %152 = math.rsqrt %151 : vector<1x256xf32>
    %153 = vector.broadcast %152 : vector<1x256xf32> to vector<4x256xf32>
    %154 = arith.mulf %144, %153 : vector<4x256xf32>
    %155 = vector.broadcast %3 : vector<4x1xf32> to vector<4x256xf32>
    %156 = arith.mulf %154, %155 : vector<4x256xf32>
    %157 = vector.broadcast %4 : vector<4x1xf32> to vector<4x256xf32>
    %158 = arith.addf %156, %157 : vector<4x256xf32>
    %159 = vector.extract_strided_slice %11 {offsets = [0, 0], sizes = [4, 1], strides = [1, 1]} : vector<4x4xf32> to vector<4x1xf32>
    %160 = vector.extract_strided_slice %158 {offsets = [0, 0], sizes = [1, 256], strides = [1, 1]} : vector<4x256xf32> to vector<1x256xf32>
    %161 = vector.broadcast %159 : vector<4x1xf32> to vector<4x256xf32>
    %162 = vector.broadcast %160 : vector<1x256xf32> to vector<4x256xf32>
    %163 = arith.mulf %161, %162 : vector<4x256xf32>
    %164 = vector.extract_strided_slice %11 {offsets = [0, 1], sizes = [4, 1], strides = [1, 1]} : vector<4x4xf32> to vector<4x1xf32>
    %165 = vector.extract_strided_slice %158 {offsets = [1, 0], sizes = [1, 256], strides = [1, 1]} : vector<4x256xf32> to vector<1x256xf32>
    %166 = vector.broadcast %164 : vector<4x1xf32> to vector<4x256xf32>
    %167 = vector.broadcast %165 : vector<1x256xf32> to vector<4x256xf32>
    %168 = arith.mulf %166, %167 : vector<4x256xf32>
    %169 = arith.addf %163, %168 : vector<4x256xf32>
    %170 = vector.extract_strided_slice %11 {offsets = [0, 2], sizes = [4, 1], strides = [1, 1]} : vector<4x4xf32> to vector<4x1xf32>
    %171 = vector.extract_strided_slice %158 {offsets = [2, 0], sizes = [1, 256], strides = [1, 1]} : vector<4x256xf32> to vector<1x256xf32>
    %172 = vector.broadcast %170 : vector<4x1xf32> to vector<4x256xf32>
    %173 = vector.broadcast %171 : vector<1x256xf32> to vector<4x256xf32>
    %174 = arith.mulf %172, %173 : vector<4x256xf32>
    %175 = arith.addf %169, %174 : vector<4x256xf32>
    %176 = vector.extract_strided_slice %11 {offsets = [0, 3], sizes = [4, 1], strides = [1, 1]} : vector<4x4xf32> to vector<4x1xf32>
    %177 = vector.extract_strided_slice %158 {offsets = [3, 0], sizes = [1, 256], strides = [1, 1]} : vector<4x256xf32> to vector<1x256xf32>
    %178 = vector.broadcast %176 : vector<4x1xf32> to vector<4x256xf32>
    %179 = vector.broadcast %177 : vector<1x256xf32> to vector<4x256xf32>
    %180 = arith.mulf %178, %179 : vector<4x256xf32>
    %181 = arith.addf %175, %180 : vector<4x256xf32>
    %182 = vector.broadcast %5 : vector<4x1xf32> to vector<4x256xf32>
    %183 = arith.addf %181, %182 : vector<4x256xf32>
    %c4 = arith.constant 4 : index
    %c0_38 = arith.constant 0 : index
    %184 = vector.load %arg8[%c4, %c0_38] : memref<24x256xf32, #tpu.memory_space<vmem>>, vector<4x256xf32>
    tpu.vector_store %arg8[%c4, %c0_38], %183 {strides = array<i32>} : memref<24x256xf32, #tpu.memory_space<vmem>>, vector<4x256xf32>,
    %185 = vector.extract_strided_slice %12 {offsets = [0, 0], sizes = [8, 1], strides = [1, 1]} : vector<8x4xf32> to vector<8x1xf32>
    %186 = vector.extract_strided_slice %136 {offsets = [0, 0], sizes = [1, 256], strides = [1, 1]} : vector<4x256xf32> to vector<1x256xf32>
    %187 = vector.broadcast %185 : vector<8x1xf32> to vector<8x256xf32>
    %188 = vector.broadcast %186 : vector<1x256xf32> to vector<8x256xf32>
    %189 = arith.mulf %187, %188 : vector<8x256xf32>
    %190 = vector.extract_strided_slice %12 {offsets = [0, 1], sizes = [8, 1], strides = [1, 1]} : vector<8x4xf32> to vector<8x1xf32>
    %191 = vector.extract_strided_slice %136 {offsets = [1, 0], sizes = [1, 256], strides = [1, 1]} : vector<4x256xf32> to vector<1x256xf32>
    %192 = vector.broadcast %190 : vector<8x1xf32> to vector<8x256xf32>
    %193 = vector.broadcast %191 : vector<1x256xf32> to vector<8x256xf32>
    %194 = arith.mulf %192, %193 : vector<8x256xf32>
    %195 = arith.addf %189, %194 : vector<8x256xf32>
    %196 = vector.extract_strided_slice %12 {offsets = [0, 2], sizes = [8, 1], strides = [1, 1]} : vector<8x4xf32> to vector<8x1xf32>
    %197 = vector.extract_strided_slice %136 {offsets = [2, 0], sizes = [1, 256], strides = [1, 1]} : vector<4x256xf32> to vector<1x256xf32>
    %198 = vector.broadcast %196 : vector<8x1xf32> to vector<8x256xf32>
    %199 = vector.broadcast %197 : vector<1x256xf32> to vector<8x256xf32>
    %200 = arith.mulf %198, %199 : vector<8x256xf32>
    %201 = arith.addf %195, %200 : vector<8x256xf32>
    %202 = vector.extract_strided_slice %12 {offsets = [0, 3], sizes = [8, 1], strides = [1, 1]} : vector<8x4xf32> to vector<8x1xf32>
    %203 = vector.extract_strided_slice %136 {offsets = [3, 0], sizes = [1, 256], strides = [1, 1]} : vector<4x256xf32> to vector<1x256xf32>
    %204 = vector.broadcast %202 : vector<8x1xf32> to vector<8x256xf32>
    %205 = vector.broadcast %203 : vector<1x256xf32> to vector<8x256xf32>
    %206 = arith.mulf %204, %205 : vector<8x256xf32>
    %207 = arith.addf %201, %206 : vector<8x256xf32>
    %208 = vector.broadcast %6 : vector<8x1xf32> to vector<8x256xf32>
    %209 = arith.addf %207, %208 : vector<8x256xf32>
    %c16 = arith.constant 16 : index
    %c0_39 = arith.constant 0 : index
    %210 = vector.load %arg8[%c16, %c0_39] : memref<24x256xf32, #tpu.memory_space<vmem>>, vector<8x256xf32>
    tpu.vector_store %arg8[%c16, %c0_39], %209 {strides = array<i32>} : memref<24x256xf32, #tpu.memory_space<vmem>>, vector<8x256xf32>,
    %c0_40 = arith.constant 0 : index
    %c0_41 = arith.constant 0 : index
    %211 = vector.load %arg8[%c0_40, %c0_41] : memref<24x256xf32, #tpu.memory_space<vmem>>, vector<24x256xf32>
    %c0_42 = arith.constant 0 : index
    %c0_43 = arith.constant 0 : index
    %212 = vector.load %arg5[%c0_42, %c0_43] : memref<24x9xf32, #tpu.memory_space<vmem>>, vector<24x9xf32>
    %213 = vector.broadcast %15 : vector<1x256xf32> to vector<24x256xf32>
    %214 = arith.mulf %211, %213 : vector<24x256xf32>
    %215 = vector.broadcast %16 : vector<1x256xf32> to vector<24x256xf32>
    %216 = arith.mulf %211, %215 : vector<24x256xf32>
    %c17_i32 = arith.constant 17 : i32
    %217 = tpu.dynamic_rotate %214 by %c17_i32 dim 1 : vector<24x256xf32>, i32 -> vector<24x256xf32>
    %218 = vector.extract_strided_slice %212 {offsets = [0, 0], sizes = [24, 1], strides = [1, 1]} : vector<24x9xf32> to vector<24x1xf32>
    %219 = vector.broadcast %218 : vector<24x1xf32> to vector<24x256xf32>
    %220 = arith.mulf %217, %219 : vector<24x256xf32>
    %c16_i32 = arith.constant 16 : i32
    %221 = tpu.dynamic_rotate %211 by %c16_i32 dim 1 : vector<24x256xf32>, i32 -> vector<24x256xf32>
    %222 = vector.extract_strided_slice %212 {offsets = [0, 1], sizes = [24, 1], strides = [1, 1]} : vector<24x9xf32> to vector<24x1xf32>
    %223 = vector.broadcast %222 : vector<24x1xf32> to vector<24x256xf32>
    %224 = arith.mulf %221, %223 : vector<24x256xf32>
    %225 = arith.addf %220, %224 : vector<24x256xf32>
    %c15_i32 = arith.constant 15 : i32
    %226 = tpu.dynamic_rotate %216 by %c15_i32 dim 1 : vector<24x256xf32>, i32 -> vector<24x256xf32>
    %227 = vector.extract_strided_slice %212 {offsets = [0, 2], sizes = [24, 1], strides = [1, 1]} : vector<24x9xf32> to vector<24x1xf32>
    %228 = vector.broadcast %227 : vector<24x1xf32> to vector<24x256xf32>
    %229 = arith.mulf %226, %228 : vector<24x256xf32>
    %230 = arith.addf %225, %229 : vector<24x256xf32>
    %231 = vector.broadcast %17 : vector<1x256xf32> to vector<24x256xf32>
    %232 = arith.mulf %230, %231 : vector<24x256xf32>
    %c1_i32 = arith.constant 1 : i32
    %233 = tpu.dynamic_rotate %214 by %c1_i32 dim 1 : vector<24x256xf32>, i32 -> vector<24x256xf32>
    %234 = vector.extract_strided_slice %212 {offsets = [0, 3], sizes = [24, 1], strides = [1, 1]} : vector<24x9xf32> to vector<24x1xf32>
    %235 = vector.broadcast %234 : vector<24x1xf32> to vector<24x256xf32>
    %236 = arith.mulf %233, %235 : vector<24x256xf32>
    %237 = vector.extract_strided_slice %212 {offsets = [0, 4], sizes = [24, 1], strides = [1, 1]} : vector<24x9xf32> to vector<24x1xf32>
    %238 = vector.broadcast %237 : vector<24x1xf32> to vector<24x256xf32>
    %239 = arith.mulf %211, %238 : vector<24x256xf32>
    %240 = arith.addf %236, %239 : vector<24x256xf32>
    %c255_i32 = arith.constant 255 : i32
    %241 = tpu.dynamic_rotate %216 by %c255_i32 dim 1 : vector<24x256xf32>, i32 -> vector<24x256xf32>
    %242 = vector.extract_strided_slice %212 {offsets = [0, 5], sizes = [24, 1], strides = [1, 1]} : vector<24x9xf32> to vector<24x1xf32>
    %243 = vector.broadcast %242 : vector<24x1xf32> to vector<24x256xf32>
    %244 = arith.mulf %241, %243 : vector<24x256xf32>
    %245 = arith.addf %240, %244 : vector<24x256xf32>
    %246 = arith.addf %232, %245 : vector<24x256xf32>
    %c241_i32 = arith.constant 241 : i32
    %247 = tpu.dynamic_rotate %214 by %c241_i32 dim 1 : vector<24x256xf32>, i32 -> vector<24x256xf32>
    %248 = vector.extract_strided_slice %212 {offsets = [0, 6], sizes = [24, 1], strides = [1, 1]} : vector<24x9xf32> to vector<24x1xf32>
    %249 = vector.broadcast %248 : vector<24x1xf32> to vector<24x256xf32>
    %250 = arith.mulf %247, %249 : vector<24x256xf32>
    %c240_i32 = arith.constant 240 : i32
    %251 = tpu.dynamic_rotate %211 by %c240_i32 dim 1 : vector<24x256xf32>, i32 -> vector<24x256xf32>
    %252 = vector.extract_strided_slice %212 {offsets = [0, 7], sizes = [24, 1], strides = [1, 1]} : vector<24x9xf32> to vector<24x1xf32>
    %253 = vector.broadcast %252 : vector<24x1xf32> to vector<24x256xf32>
    %254 = arith.mulf %251, %253 : vector<24x256xf32>
    %255 = arith.addf %250, %254 : vector<24x256xf32>
    %c239_i32 = arith.constant 239 : i32
    %256 = tpu.dynamic_rotate %216 by %c239_i32 dim 1 : vector<24x256xf32>, i32 -> vector<24x256xf32>
    %257 = vector.extract_strided_slice %212 {offsets = [0, 8], sizes = [24, 1], strides = [1, 1]} : vector<24x9xf32> to vector<24x1xf32>
    %258 = vector.broadcast %257 : vector<24x1xf32> to vector<24x256xf32>
    %259 = arith.mulf %256, %258 : vector<24x256xf32>
    %260 = arith.addf %255, %259 : vector<24x256xf32>
    %261 = vector.broadcast %18 : vector<1x256xf32> to vector<24x256xf32>
    %262 = arith.mulf %260, %261 : vector<24x256xf32>
    %263 = arith.addf %246, %262 : vector<24x256xf32>
    %264 = vector.extract_strided_slice %263 {offsets = [0, 0], sizes = [4, 256], strides = [1, 1]} : vector<24x256xf32> to vector<4x256xf32>
    %265 = vector.broadcast %7 : vector<4x1xf32> to vector<4x256xf32>
    %266 = arith.addf %264, %265 : vector<4x256xf32>
    %267 = vector.extract_strided_slice %263 {offsets = [8, 0], sizes = [8, 256], strides = [1, 1]} : vector<24x256xf32> to vector<8x256xf32>
    %268 = vector.broadcast %8 : vector<8x1xf32> to vector<8x256xf32>
    %269 = arith.addf %267, %268 : vector<8x256xf32>
    %270 = vector.extract_strided_slice %269 {offsets = [0, 0], sizes = [4, 256], strides = [1, 1]} : vector<8x256xf32> to vector<4x256xf32>
    %271 = vector.extract_strided_slice %269 {offsets = [4, 0], sizes = [4, 256], strides = [1, 1]} : vector<8x256xf32> to vector<4x256xf32>
    %272 = arith.mulf %266, %266 : vector<4x256xf32>
    %cst_44 = arith.constant dense<0.000000e+00> : vector<4xf32>
    %273 = vector.multi_reduction <add>, %272, %cst_44 [1] : vector<4x256xf32> to vector<4xf32>
    %274 = vector.shape_cast %273 : vector<4xf32> to vector<4x1xf32>
    %cst_45 = arith.constant 1.000000e-24 : f32
    %275 = vector.broadcast %cst_45 : f32 to vector<4x1xf32>
    %276 = arith.maximumf %274, %275 : vector<4x1xf32>
    %277 = math.rsqrt %276 : vector<4x1xf32>
    %278 = vector.broadcast %277 : vector<4x1xf32> to vector<4x256xf32>
    %279 = arith.mulf %266, %278 : vector<4x256xf32>
    %280 = arith.mulf %270, %270 : vector<4x256xf32>
    %cst_46 = arith.constant dense<0.000000e+00> : vector<4xf32>
    %281 = vector.multi_reduction <add>, %280, %cst_46 [1] : vector<4x256xf32> to vector<4xf32>
    %282 = vector.shape_cast %281 : vector<4xf32> to vector<4x1xf32>
    %cst_47 = arith.constant 1.000000e-24 : f32
    %283 = vector.broadcast %cst_47 : f32 to vector<4x1xf32>
    %284 = arith.maximumf %282, %283 : vector<4x1xf32>
    %285 = math.rsqrt %284 : vector<4x1xf32>
    %286 = vector.broadcast %285 : vector<4x1xf32> to vector<4x256xf32>
    %287 = arith.mulf %270, %286 : vector<4x256xf32>
    %288 = vector.extract_strided_slice %287 {offsets = [0, 0], sizes = [1, 256], strides = [1, 1]} : vector<4x256xf32> to vector<1x256xf32>
    %289 = vector.broadcast %288 : vector<1x256xf32> to vector<4x256xf32>
    %290 = arith.mulf %279, %289 : vector<4x256xf32>
    %cst_48 = arith.constant dense<0.000000e+00> : vector<4xf32>
    %291 = vector.multi_reduction <add>, %290, %cst_48 [1] : vector<4x256xf32> to vector<4xf32>
    %292 = vector.shape_cast %291 : vector<4xf32> to vector<4x1xf32>
    %293 = vector.extract_strided_slice %287 {offsets = [1, 0], sizes = [1, 256], strides = [1, 1]} : vector<4x256xf32> to vector<1x256xf32>
    %294 = vector.broadcast %293 : vector<1x256xf32> to vector<4x256xf32>
    %295 = arith.mulf %279, %294 : vector<4x256xf32>
    %cst_49 = arith.constant dense<0.000000e+00> : vector<4xf32>
    %296 = vector.multi_reduction <add>, %295, %cst_49 [1] : vector<4x256xf32> to vector<4xf32>
    %297 = vector.shape_cast %296 : vector<4xf32> to vector<4x1xf32>
    %298 = vector.extract_strided_slice %287 {offsets = [2, 0], sizes = [1, 256], strides = [1, 1]} : vector<4x256xf32> to vector<1x256xf32>
    %299 = vector.broadcast %298 : vector<1x256xf32> to vector<4x256xf32>
    %300 = arith.mulf %279, %299 : vector<4x256xf32>
    %cst_50 = arith.constant dense<0.000000e+00> : vector<4xf32>
    %301 = vector.multi_reduction <add>, %300, %cst_50 [1] : vector<4x256xf32> to vector<4xf32>
    %302 = vector.shape_cast %301 : vector<4xf32> to vector<4x1xf32>
    %303 = vector.extract_strided_slice %287 {offsets = [3, 0], sizes = [1, 256], strides = [1, 1]} : vector<4x256xf32> to vector<1x256xf32>
    %304 = vector.broadcast %303 : vector<1x256xf32> to vector<4x256xf32>
    %305 = arith.mulf %279, %304 : vector<4x256xf32>
    %cst_51 = arith.constant dense<0.000000e+00> : vector<4xf32>
    %306 = vector.multi_reduction <add>, %305, %cst_51 [1] : vector<4x256xf32> to vector<4xf32>
    %307 = vector.shape_cast %306 : vector<4xf32> to vector<4x1xf32>
    %308 = arith.maximumf %292, %297 : vector<4x1xf32>
    %309 = arith.maximumf %308, %302 : vector<4x1xf32>
    %310 = arith.maximumf %309, %307 : vector<4x1xf32>
    %311 = arith.subf %292, %310 : vector<4x1xf32>
    %312 = math.exp %311 : vector<4x1xf32>
    %313 = arith.subf %297, %310 : vector<4x1xf32>
    %314 = math.exp %313 : vector<4x1xf32>
    %315 = arith.subf %302, %310 : vector<4x1xf32>
    %316 = math.exp %315 : vector<4x1xf32>
    %317 = arith.subf %307, %310 : vector<4x1xf32>
    %318 = math.exp %317 : vector<4x1xf32>
    %319 = arith.addf %312, %314 : vector<4x1xf32>
    %320 = arith.addf %319, %316 : vector<4x1xf32>
    %321 = arith.addf %320, %318 : vector<4x1xf32>
    %322 = tpu.reciprocal %321 {approx = true} : vector<4x1xf32> -> vector<4x1xf32>
    %323 = arith.mulf %312, %322 : vector<4x1xf32>
    %324 = vector.extract_strided_slice %271 {offsets = [0, 0], sizes = [1, 256], strides = [1, 1]} : vector<4x256xf32> to vector<1x256xf32>
    %325 = vector.broadcast %323 : vector<4x1xf32> to vector<4x256xf32>
    %326 = vector.broadcast %324 : vector<1x256xf32> to vector<4x256xf32>
    %327 = arith.mulf %325, %326 : vector<4x256xf32>
    %328 = arith.mulf %314, %322 : vector<4x1xf32>
    %329 = vector.extract_strided_slice %271 {offsets = [1, 0], sizes = [1, 256], strides = [1, 1]} : vector<4x256xf32> to vector<1x256xf32>
    %330 = vector.broadcast %328 : vector<4x1xf32> to vector<4x256xf32>
    %331 = vector.broadcast %329 : vector<1x256xf32> to vector<4x256xf32>
    %332 = arith.mulf %330, %331 : vector<4x256xf32>
    %333 = arith.addf %327, %332 : vector<4x256xf32>
    %334 = arith.mulf %316, %322 : vector<4x1xf32>
    %335 = vector.extract_strided_slice %271 {offsets = [2, 0], sizes = [1, 256], strides = [1, 1]} : vector<4x256xf32> to vector<1x256xf32>
    %336 = vector.broadcast %334 : vector<4x1xf32> to vector<4x256xf32>
    %337 = vector.broadcast %335 : vector<1x256xf32> to vector<4x256xf32>
    %338 = arith.mulf %336, %337 : vector<4x256xf32>
    %339 = arith.addf %333, %338 : vector<4x256xf32>
    %340 = arith.mulf %318, %322 : vector<4x1xf32>
    %341 = vector.extract_strided_slice %271 {offsets = [3, 0], sizes = [1, 256], strides = [1, 1]} : vector<4x256xf32> to vector<1x256xf32>
    %342 = vector.broadcast %340 : vector<4x1xf32> to vector<4x256xf32>
    %343 = vector.broadcast %341 : vector<1x256xf32> to vector<4x256xf32>
    %344 = arith.mulf %342, %343 : vector<4x256xf32>
    %345 = arith.addf %339, %344 : vector<4x256xf32>
    %346 = vector.extract_strided_slice %13 {offsets = [0, 0], sizes = [4, 1], strides = [1, 1]} : vector<4x4xf32> to vector<4x1xf32>
    %347 = vector.extract_strided_slice %345 {offsets = [0, 0], sizes = [1, 256], strides = [1, 1]} : vector<4x256xf32> to vector<1x256xf32>
    %348 = vector.broadcast %346 : vector<4x1xf32> to vector<4x256xf32>
    %349 = vector.broadcast %347 : vector<1x256xf32> to vector<4x256xf32>
    %350 = arith.mulf %348, %349 : vector<4x256xf32>
    %351 = vector.extract_strided_slice %13 {offsets = [0, 1], sizes = [4, 1], strides = [1, 1]} : vector<4x4xf32> to vector<4x1xf32>
    %352 = vector.extract_strided_slice %345 {offsets = [1, 0], sizes = [1, 256], strides = [1, 1]} : vector<4x256xf32> to vector<1x256xf32>
    %353 = vector.broadcast %351 : vector<4x1xf32> to vector<4x256xf32>
    %354 = vector.broadcast %352 : vector<1x256xf32> to vector<4x256xf32>
    %355 = arith.mulf %353, %354 : vector<4x256xf32>
    %356 = arith.addf %350, %355 : vector<4x256xf32>
    %357 = vector.extract_strided_slice %13 {offsets = [0, 2], sizes = [4, 1], strides = [1, 1]} : vector<4x4xf32> to vector<4x1xf32>
    %358 = vector.extract_strided_slice %345 {offsets = [2, 0], sizes = [1, 256], strides = [1, 1]} : vector<4x256xf32> to vector<1x256xf32>
    %359 = vector.broadcast %357 : vector<4x1xf32> to vector<4x256xf32>
    %360 = vector.broadcast %358 : vector<1x256xf32> to vector<4x256xf32>
    %361 = arith.mulf %359, %360 : vector<4x256xf32>
    %362 = arith.addf %356, %361 : vector<4x256xf32>
    %363 = vector.extract_strided_slice %13 {offsets = [0, 3], sizes = [4, 1], strides = [1, 1]} : vector<4x4xf32> to vector<4x1xf32>
    %364 = vector.extract_strided_slice %345 {offsets = [3, 0], sizes = [1, 256], strides = [1, 1]} : vector<4x256xf32> to vector<1x256xf32>
    %365 = vector.broadcast %363 : vector<4x1xf32> to vector<4x256xf32>
    %366 = vector.broadcast %364 : vector<1x256xf32> to vector<4x256xf32>
    %367 = arith.mulf %365, %366 : vector<4x256xf32>
    %368 = arith.addf %362, %367 : vector<4x256xf32>
    %369 = vector.broadcast %9 : vector<4x1xf32> to vector<4x256xf32>
    %370 = arith.addf %368, %369 : vector<4x256xf32>
    %c0_52 = arith.constant 0 : index
    %c0_53 = arith.constant 0 : index
    %c0_54 = arith.constant 0 : index
    %371 = vector.load %arg2[%c0_52, %c0_53, %c0_54] : memref<2x4x256xf32, #tpu.memory_space<vmem>>, vector<1x4x256xf32>
    %372 = vector.shape_cast %371 : vector<1x4x256xf32> to vector<4x256xf32>
    %373 = arith.addf %370, %372 : vector<4x256xf32>
    %c0_55 = arith.constant 0 : index
    %c0_56 = arith.constant 0 : index
    %c0_57 = arith.constant 0 : index
    %374 = vector.load %arg7[%c0_55, %c0_56, %c0_57] : memref<2x4x256xf32, #tpu.memory_space<vmem>>, vector<1x4x256xf32>
    %375 = vector.shape_cast %374 : vector<1x4x256xf32> to vector<4x256xf32>
    %376 = vector.shape_cast %373 : vector<4x256xf32> to vector<1x4x256xf32>
    tpu.vector_store %arg7[%c0_55, %c0_56, %c0_57], %376 {strides = array<i32>} : memref<2x4x256xf32, #tpu.memory_space<vmem>>, vector<1x4x256xf32>,
    %377 = vector.extract_strided_slice %263 {offsets = [4, 0], sizes = [4, 256], strides = [1, 1]} : vector<24x256xf32> to vector<4x256xf32>
    %378 = vector.broadcast %7 : vector<4x1xf32> to vector<4x256xf32>
    %379 = arith.addf %377, %378 : vector<4x256xf32>
    %380 = vector.extract_strided_slice %263 {offsets = [16, 0], sizes = [8, 256], strides = [1, 1]} : vector<24x256xf32> to vector<8x256xf32>
    %381 = vector.broadcast %8 : vector<8x1xf32> to vector<8x256xf32>
    %382 = arith.addf %380, %381 : vector<8x256xf32>
    %383 = vector.extract_strided_slice %382 {offsets = [0, 0], sizes = [4, 256], strides = [1, 1]} : vector<8x256xf32> to vector<4x256xf32>
    %384 = vector.extract_strided_slice %382 {offsets = [4, 0], sizes = [4, 256], strides = [1, 1]} : vector<8x256xf32> to vector<4x256xf32>
    %385 = arith.mulf %379, %379 : vector<4x256xf32>
    %cst_58 = arith.constant dense<0.000000e+00> : vector<4xf32>
    %386 = vector.multi_reduction <add>, %385, %cst_58 [1] : vector<4x256xf32> to vector<4xf32>
    %387 = vector.shape_cast %386 : vector<4xf32> to vector<4x1xf32>
    %cst_59 = arith.constant 1.000000e-24 : f32
    %388 = vector.broadcast %cst_59 : f32 to vector<4x1xf32>
    %389 = arith.maximumf %387, %388 : vector<4x1xf32>
    %390 = math.rsqrt %389 : vector<4x1xf32>
    %391 = vector.broadcast %390 : vector<4x1xf32> to vector<4x256xf32>
    %392 = arith.mulf %379, %391 : vector<4x256xf32>
    %393 = arith.mulf %383, %383 : vector<4x256xf32>
    %cst_60 = arith.constant dense<0.000000e+00> : vector<4xf32>
    %394 = vector.multi_reduction <add>, %393, %cst_60 [1] : vector<4x256xf32> to vector<4xf32>
    %395 = vector.shape_cast %394 : vector<4xf32> to vector<4x1xf32>
    %cst_61 = arith.constant 1.000000e-24 : f32
    %396 = vector.broadcast %cst_61 : f32 to vector<4x1xf32>
    %397 = arith.maximumf %395, %396 : vector<4x1xf32>
    %398 = math.rsqrt %397 : vector<4x1xf32>
    %399 = vector.broadcast %398 : vector<4x1xf32> to vector<4x256xf32>
    %400 = arith.mulf %383, %399 : vector<4x256xf32>
    %401 = vector.extract_strided_slice %400 {offsets = [0, 0], sizes = [1, 256], strides = [1, 1]} : vector<4x256xf32> to vector<1x256xf32>
    %402 = vector.broadcast %401 : vector<1x256xf32> to vector<4x256xf32>
    %403 = arith.mulf %392, %402 : vector<4x256xf32>
    %cst_62 = arith.constant dense<0.000000e+00> : vector<4xf32>
    %404 = vector.multi_reduction <add>, %403, %cst_62 [1] : vector<4x256xf32> to vector<4xf32>
    %405 = vector.shape_cast %404 : vector<4xf32> to vector<4x1xf32>
    %406 = vector.extract_strided_slice %400 {offsets = [1, 0], sizes = [1, 256], strides = [1, 1]} : vector<4x256xf32> to vector<1x256xf32>
    %407 = vector.broadcast %406 : vector<1x256xf32> to vector<4x256xf32>
    %408 = arith.mulf %392, %407 : vector<4x256xf32>
    %cst_63 = arith.constant dense<0.000000e+00> : vector<4xf32>
    %409 = vector.multi_reduction <add>, %408, %cst_63 [1] : vector<4x256xf32> to vector<4xf32>
    %410 = vector.shape_cast %409 : vector<4xf32> to vector<4x1xf32>
    %411 = vector.extract_strided_slice %400 {offsets = [2, 0], sizes = [1, 256], strides = [1, 1]} : vector<4x256xf32> to vector<1x256xf32>
    %412 = vector.broadcast %411 : vector<1x256xf32> to vector<4x256xf32>
    %413 = arith.mulf %392, %412 : vector<4x256xf32>
    %cst_64 = arith.constant dense<0.000000e+00> : vector<4xf32>
    %414 = vector.multi_reduction <add>, %413, %cst_64 [1] : vector<4x256xf32> to vector<4xf32>
    %415 = vector.shape_cast %414 : vector<4xf32> to vector<4x1xf32>
    %416 = vector.extract_strided_slice %400 {offsets = [3, 0], sizes = [1, 256], strides = [1, 1]} : vector<4x256xf32> to vector<1x256xf32>
    %417 = vector.broadcast %416 : vector<1x256xf32> to vector<4x256xf32>
    %418 = arith.mulf %392, %417 : vector<4x256xf32>
    %cst_65 = arith.constant dense<0.000000e+00> : vector<4xf32>
    %419 = vector.multi_reduction <add>, %418, %cst_65 [1] : vector<4x256xf32> to vector<4xf32>
    %420 = vector.shape_cast %419 : vector<4xf32> to vector<4x1xf32>
    %421 = arith.maximumf %405, %410 : vector<4x1xf32>
    %422 = arith.maximumf %421, %415 : vector<4x1xf32>
    %423 = arith.maximumf %422, %420 : vector<4x1xf32>
    %424 = arith.subf %405, %423 : vector<4x1xf32>
    %425 = math.exp %424 : vector<4x1xf32>
    %426 = arith.subf %410, %423 : vector<4x1xf32>
    %427 = math.exp %426 : vector<4x1xf32>
    %428 = arith.subf %415, %423 : vector<4x1xf32>
    %429 = math.exp %428 : vector<4x1xf32>
    %430 = arith.subf %420, %423 : vector<4x1xf32>
    %431 = math.exp %430 : vector<4x1xf32>
    %432 = arith.addf %425, %427 : vector<4x1xf32>
    %433 = arith.addf %432, %429 : vector<4x1xf32>
    %434 = arith.addf %433, %431 : vector<4x1xf32>
    %435 = tpu.reciprocal %434 {approx = true} : vector<4x1xf32> -> vector<4x1xf32>
    %436 = arith.mulf %425, %435 : vector<4x1xf32>
    %437 = vector.extract_strided_slice %384 {offsets = [0, 0], sizes = [1, 256], strides = [1, 1]} : vector<4x256xf32> to vector<1x256xf32>
    %438 = vector.broadcast %436 : vector<4x1xf32> to vector<4x256xf32>
    %439 = vector.broadcast %437 : vector<1x256xf32> to vector<4x256xf32>
    %440 = arith.mulf %438, %439 : vector<4x256xf32>
    %441 = arith.mulf %427, %435 : vector<4x1xf32>
    %442 = vector.extract_strided_slice %384 {offsets = [1, 0], sizes = [1, 256], strides = [1, 1]} : vector<4x256xf32> to vector<1x256xf32>
    %443 = vector.broadcast %441 : vector<4x1xf32> to vector<4x256xf32>
    %444 = vector.broadcast %442 : vector<1x256xf32> to vector<4x256xf32>
    %445 = arith.mulf %443, %444 : vector<4x256xf32>
    %446 = arith.addf %440, %445 : vector<4x256xf32>
    %447 = arith.mulf %429, %435 : vector<4x1xf32>
    %448 = vector.extract_strided_slice %384 {offsets = [2, 0], sizes = [1, 256], strides = [1, 1]} : vector<4x256xf32> to vector<1x256xf32>
    %449 = vector.broadcast %447 : vector<4x1xf32> to vector<4x256xf32>
    %450 = vector.broadcast %448 : vector<1x256xf32> to vector<4x256xf32>
    %451 = arith.mulf %449, %450 : vector<4x256xf32>
    %452 = arith.addf %446, %451 : vector<4x256xf32>
    %453 = arith.mulf %431, %435 : vector<4x1xf32>
    %454 = vector.extract_strided_slice %384 {offsets = [3, 0], sizes = [1, 256], strides = [1, 1]} : vector<4x256xf32> to vector<1x256xf32>
    %455 = vector.broadcast %453 : vector<4x1xf32> to vector<4x256xf32>
    %456 = vector.broadcast %454 : vector<1x256xf32> to vector<4x256xf32>
    %457 = arith.mulf %455, %456 : vector<4x256xf32>
    %458 = arith.addf %452, %457 : vector<4x256xf32>
    %459 = vector.extract_strided_slice %13 {offsets = [0, 0], sizes = [4, 1], strides = [1, 1]} : vector<4x4xf32> to vector<4x1xf32>
    %460 = vector.extract_strided_slice %458 {offsets = [0, 0], sizes = [1, 256], strides = [1, 1]} : vector<4x256xf32> to vector<1x256xf32>
    %461 = vector.broadcast %459 : vector<4x1xf32> to vector<4x256xf32>
    %462 = vector.broadcast %460 : vector<1x256xf32> to vector<4x256xf32>
    %463 = arith.mulf %461, %462 : vector<4x256xf32>
    %464 = vector.extract_strided_slice %13 {offsets = [0, 1], sizes = [4, 1], strides = [1, 1]} : vector<4x4xf32> to vector<4x1xf32>
    %465 = vector.extract_strided_slice %458 {offsets = [1, 0], sizes = [1, 256], strides = [1, 1]} : vector<4x256xf32> to vector<1x256xf32>
    %466 = vector.broadcast %464 : vector<4x1xf32> to vector<4x256xf32>
    %467 = vector.broadcast %465 : vector<1x256xf32> to vector<4x256xf32>
    %468 = arith.mulf %466, %467 : vector<4x256xf32>
    %469 = arith.addf %463, %468 : vector<4x256xf32>
    %470 = vector.extract_strided_slice %13 {offsets = [0, 2], sizes = [4, 1], strides = [1, 1]} : vector<4x4xf32> to vector<4x1xf32>
    %471 = vector.extract_strided_slice %458 {offsets = [2, 0], sizes = [1, 256], strides = [1, 1]} : vector<4x256xf32> to vector<1x256xf32>
    %472 = vector.broadcast %470 : vector<4x1xf32> to vector<4x256xf32>
    %473 = vector.broadcast %471 : vector<1x256xf32> to vector<4x256xf32>
    %474 = arith.mulf %472, %473 : vector<4x256xf32>
    %475 = arith.addf %469, %474 : vector<4x256xf32>
    %476 = vector.extract_strided_slice %13 {offsets = [0, 3], sizes = [4, 1], strides = [1, 1]} : vector<4x4xf32> to vector<4x1xf32>
    %477 = vector.extract_strided_slice %458 {offsets = [3, 0], sizes = [1, 256], strides = [1, 1]} : vector<4x256xf32> to vector<1x256xf32>
    %478 = vector.broadcast %476 : vector<4x1xf32> to vector<4x256xf32>
    %479 = vector.broadcast %477 : vector<1x256xf32> to vector<4x256xf32>
    %480 = arith.mulf %478, %479 : vector<4x256xf32>
    %481 = arith.addf %475, %480 : vector<4x256xf32>
    %482 = vector.broadcast %9 : vector<4x1xf32> to vector<4x256xf32>
    %483 = arith.addf %481, %482 : vector<4x256xf32>
    %c1_66 = arith.constant 1 : index
    %c0_67 = arith.constant 0 : index
    %c0_68 = arith.constant 0 : index
    %484 = vector.load %arg2[%c1_66, %c0_67, %c0_68] : memref<2x4x256xf32, #tpu.memory_space<vmem>>, vector<1x4x256xf32>
    %485 = vector.shape_cast %484 : vector<1x4x256xf32> to vector<4x256xf32>
    %486 = arith.addf %483, %485 : vector<4x256xf32>
    %c1_69 = arith.constant 1 : index
    %c0_70 = arith.constant 0 : index
    %c0_71 = arith.constant 0 : index
    %487 = vector.load %arg7[%c1_69, %c0_70, %c0_71] : memref<2x4x256xf32, #tpu.memory_space<vmem>>, vector<1x4x256xf32>
    %488 = vector.shape_cast %487 : vector<1x4x256xf32> to vector<4x256xf32>
    %489 = vector.shape_cast %486 : vector<4x256xf32> to vector<1x4x256xf32>
    tpu.vector_store %arg7[%c1_69, %c0_70, %c0_71], %489 {strides = array<i32>} : memref<2x4x256xf32, #tpu.memory_space<vmem>>, vector<1x4x256xf32>,
    return
  }
  func.func @transform_0(%arg0: i32) -> (i32, i32, i32) {
    %c0_i32 = arith.constant 0 : i32
    %c0_i32_0 = arith.constant 0 : i32
    %c0_i32_1 = arith.constant 0 : i32
    return %arg0, %c0_i32, %c0_i32_0 : i32, i32, i32
  }
  func.func @transform_1(%arg0: i32) -> (i32, i32, i32) {
    %c0_i32 = arith.constant 0 : i32
    %c0_i32_0 = arith.constant 0 : i32
    %c0_i32_1 = arith.constant 0 : i32
    return %arg0, %c0_i32, %c0_i32_0 : i32, i32, i32
  }
  func.func @transform_2(%arg0: i32) -> (i32, i32) {
    %c0_i32 = arith.constant 0 : i32
    %c0_i32_0 = arith.constant 0 : i32
    %c0_i32_1 = arith.constant 0 : i32
    return %c0_i32, %c0_i32_0 : i32, i32
  }
  func.func @transform_3(%arg0: i32) -> (i32, i32) {
    %c0_i32 = arith.constant 0 : i32
    %c0_i32_0 = arith.constant 0 : i32
    %c0_i32_1 = arith.constant 0 : i32
    return %c0_i32, %c0_i32_0 : i32, i32
  }
  func.func @transform_4(%arg0: i32) -> (i32, i32) {
    %c0_i32 = arith.constant 0 : i32
    %c0_i32_0 = arith.constant 0 : i32
    %c0_i32_1 = arith.constant 0 : i32
    return %c0_i32, %c0_i32_0 : i32, i32
  }
  func.func @transform_5(%arg0: i32) -> (i32, i32) {
    %c0_i32 = arith.constant 0 : i32
    %c0_i32_0 = arith.constant 0 : i32
    %c0_i32_1 = arith.constant 0 : i32
    return %c0_i32, %c0_i32_0 : i32, i32
  }
  func.func @transform_6(%arg0: i32) -> (i32, i32, i32) {
    %c0_i32 = arith.constant 0 : i32
    %c0_i32_0 = arith.constant 0 : i32
    %c0_i32_1 = arith.constant 0 : i32
    return %arg0, %c0_i32, %c0_i32_0 : i32, i32, i32
  }
}

</mosaic_0001>

<bundles_post_ra>
// kernel: _lambda_.1
= control target key start
LH: loop header
LB: loop body
LE: loop exit
PB: predicated region body
PF: predicated region fallthrough
CT: control target
= control target key end

     0   :  { %v1792_v0 = vmov 0   ;;  %v1793_v4 = vmov 1   ;;  %v1794_v7 = vmov 2   ;;  %v1795_v9 = vmov 3   ;;  %s1804_s23 = smov 112   ;;  %s1806_s24 = smov 15   ;;  %s2750_s3 = inlined_call_operand.vmem [shape: f32[16,4], index: 3, kind: input, shape index: {}]   ;;  %s2751_s2 = inlined_call_operand.vmem [shape: f32[44,1], index: 2, kind: input, shape index: {}]   ;;  %s2752_s4 = inlined_call_operand.vmem [shape: f32[24,9], index: 4, kind: input, shape index: {}]   ;;  %s2753_s0 = inlined_call_operand.vmem [shape: f32[2,4,256], index: 0, kind: input, shape index: {}]   ;;  %s2754_s1 = inlined_call_operand.vmem [shape: f32[2,4,256], index: 1, kind: input, shape index: {}]   ;;  %s2755_s5 = inlined_call_operand.vmem [shape: f32[4,256], index: 5, kind: input, shape index: {}]   ;;  %s2756_s6 = inlined_call_operand.vmem [shape: f32[2,4,256], index: 6, kind: output, shape index: {}]  }
   0x1   :  { %1714 = vset.pattern.permute.xlu1 %v1792_v0  ;;  %1713 = vset.pattern.permute.xlu0 %v1792_v0  ;;  %v29_v1 = vld [vmem:[%s2750_s3] sm:$0xff]  ;;  %v24_v3 = vld [vmem:[%s2751_s2 + $0x8] sm:$0xff]  ;;  %v1871_v8 = vld [vmem:[%s2752_s4 + $0x10] sm:$0xff]  ;;  %vm36_vm0 = vcmask 1043456   ;;  %v1796_v48 = vmov 7   ;;  %v1797_v58 = vmov 4  }
   0x2   :  { %v23_v2 = vld [vmem:[%s2751_s2] sm:$0xff]  ;;  %188 = vperm.xlu1 %1714, %v29_v1   ;;  %v30_v5 = vld [vmem:[%s2750_s3 + $0x8] sm:$0xff]  ;;  %v25_v12 = vld [vmem:[%s2751_s2 + $0x10] sm:$0xff]  ;;  %s1807_s25 = smov 1   ;;  %s1808_s26 = smov 113   ;;  %vm1476_vm9 = vcmask 1047556  }
   0x3   :  { %90 = vperm.xlu0 %1713, %v23_v2   ;;  %v1864_v6 = vld [vmem:[%s2752_s4 + $0x8] sm:$0xff]  ;;  %v1879_v10 = vld [vmem:[%s2753_s0] sm:$0xff]  ;;  %v26_v17 = vld [vmem:[%s2751_s2 + $0x18] sm:$0xff]  ;;  %s1809_s27 = smov 127   ;;  %s1810_s28 = smov 111  }
   0x4   :  { %v1884_v11 = vld [vmem:[%s2753_s0 + $0x8] sm:$0xff]  ;;  %v34_v13 = vcombine.high %v1879_v10, %v1879_v10  ;;  %v1895_v14 = vld [vmem:[%s2754_s1] sm:$0xff]  ;;  %v37_v19 = vsel %vm36_vm0, %v1879_v10, 0.0 }
   0x5   :  { %v443_v15 = vcombine.high %v1884_v11, %v1884_v11  ;;  %v1903_v16 = vld [vmem:[%s2754_s1 + $0x8] sm:$0xff]  ;;  %v112_v18 = vcombine.high %v1895_v14, %v1895_v14  ;;  %v445_v21 = vsel %vm36_vm0, %v1884_v11, 0.0  ;;  %v38_v24 = vrot.slane %v37_v19, 4  ;;  %v1934_v49 = vld [vmem:[%s2752_s4] sm:$0xff]  ;;  %s1803_s4 = smov 16  }
   0x6   :  { %1715 = vset.pattern.permute.xlu1 %v1793_v4  ;;  %v44_v20 = vsel %vm36_vm0, %v34_v13, 0.0  ;;  %v500_v23 = vcombine.high %v1903_v16, %v1903_v16  ;;  %v114_v26 = vsel %vm36_vm0, %v1895_v14, 0.0  ;;  %v446_v28 = vrot.slane %v445_v21, 4 }
   0x7   :  { %166 = vperm.xlu0 %1713, %v24_v3   ;;  %213 = vperm.xlu1 %1715, %v29_v1   ;;  %v452_v22 = vsel %vm36_vm0, %v443_v15, 0.0  ;;  %v45_v25 = vrot.slane %v44_v20, 4  ;;  %v121_v27 = vsel %vm36_vm0, %v112_v18, 0.0  ;;  %v502_v30 = vsel %vm36_vm0, %v1903_v16, 0.0 }
   0x8   :  { %v453_v29 = vrot.slane %v452_v22, 4  ;;  %v509_v31 = vsel %vm36_vm0, %v500_v23, 0.0  ;;  %v115_v32 = vrot.slane %v114_v26, 4  ;;  %v122_v33 = vrot.slane %v121_v27, 4 }
   0x9   :  { %v39_v34 = vadd.f32 %v38_v24, %v37_v19  ;;  %v46_v35 = vadd.f32 %v45_v25, %v44_v20  ;;  %v447_v36 = vadd.f32 %v446_v28, %v445_v21  ;;  %v503_v38 = vrot.slane %v502_v30, 4 }
   0xa   :  { %v454_v37 = vadd.f32 %v453_v29, %v452_v22  ;;  %v510_v39 = vrot.slane %v509_v31, 4  ;;  %v116_v40 = vadd.f32 %v115_v32, %v114_v26  ;;  %v123_v41 = vadd.f32 %v122_v33, %v121_v27 }
   0xb   :  { %301 = vperm.xlu0 %1713, %v30_v5   ;;  %328 = vperm.xlu1 %1715, %v30_v5   ;;  %v40_v42 = vrot.slane %v39_v34, 2  ;;  %v47_v43 = vrot.slane %v46_v35, 2  ;;  %v448_v44 = vrot.slane %v447_v36, 2  ;;  %v504_v46 = vadd.f32 %v503_v38, %v502_v30 }
   0xc   :  { %v455_v45 = vrot.slane %v454_v37, 2  ;;  %v511_v47 = vadd.f32 %v510_v39, %v509_v31  ;;  %v117_v50 = vrot.slane %v116_v40, 2  ;;  %v124_v51 = vrot.slane %v123_v41, 2 }
   0xd   :  { %v41_v52 = vadd.f32 %v40_v42, %v39_v34  ;;  %v48_v53 = vadd.f32 %v47_v43, %v46_v35  ;;  %v449_v54 = vadd.f32 %v448_v44, %v447_v36  ;;  %v505_v56 = vrot.slane %v504_v46, 2 }
   0xe   :  { %v456_v55 = vadd.f32 %v455_v45, %v454_v37  ;;  %v512_v57 = vrot.slane %v511_v47, 2  ;;  %v118_v59 = vadd.f32 %v117_v50, %v116_v40  ;;  %v125_v60 = vadd.f32 %v124_v51, %v123_v41 }
   0xf   :  { %856 = vperm.xlu0 %1713, %v1864_v6   ;;  %1716 = vset.pattern.permute.xlu1 %v1794_v7  ;;  %v42_v61 = vrot.slane %v41_v52, 1  ;;  %v49_v62 = vrot.slane %v48_v53, 1  ;;  %v450_v63 = vrot.slane %v449_v54, 1  ;;  %v506_v2 = vadd.f32 %v505_v56, %v504_v46 }
  0x10   :  { %358 = vperm.xlu1 %1716, %v30_v5   ;;  %v513_v3 = vadd.f32 %v512_v57, %v511_v47  ;;  %v1799_v35 = vmov 8   ;;  %v1800_v40 = vmov 5  }
  0x11   :  { %v43_v13 = vadd.f32 %v42_v61, %v41_v52  ;;  %v50_v15 = vadd.f32 %v49_v62, %v48_v53  ;;  %v451_v18 = vadd.f32 %v450_v63, %v449_v54  ;;  %v507_v20 = vrot.slane %v506_v2, 1 }
  0x12   :  { %v514_v21 = vrot.slane %v513_v3, 1 }
  0x13   :  { %1720 = vset.pattern.permute.xlu0 %v1793_v4  ;;  %v52_v23 = vmul.f32 0.25, %v43_v13  ;;  %v53_v24 = vmul.f32 0.25, %v50_v15  ;;  %v459_v25 = vmul.f32 0.25, %v451_v18  ;;  %v508_v27 = vadd.f32 %v507_v20, %v506_v2 }
  0x14   :  { %898 = vperm.xlu0 %1720, %v1871_v8   ;;  %1717 = vset.pattern.permute.xlu1 %v1795_v9  ;;  %v515_v28 = vadd.f32 %v514_v21, %v513_v3 }
  0x15   :  { %265 = vperm.xlu1 %1717, %v29_v1   ;;  %v56_v31 = vcombine.low %v52_v23, %v53_v24  ;;  %v516_v33 = vmul.f32 0.25, %v508_v27 }
  0x16   :  { %v517_v34 = vmul.f32 0.25, %v515_v28 }
  0x17   :  { %v1951_v37 = vsub.f32 %v1879_v10, %v56_v31 }
  0x18   :  { %1721 = vset.pattern.permute.xlu0 %v1794_v7  ;;  %v520_v39 = vcombine.low %v516_v33, %v517_v34 }
  0x19   :  { %239 = vperm.xlu0 %1721, %v29_v1   ;;  %1718 = vset.pattern.permute.xlu1 %v1792_v0  ;;  %v457_v1 = vrot.slane %v456_v55, 1  ;;  %v59_v42 = vmul.f32 %v1951_v37, %v1951_v37 }
  0x1a   :  { %292 = vperm.xlu1 %1718, %v25_v12   ;;  %v126_v12 = vrot.slane %v125_v60, 1  ;;  %v1967_v43 = vsub.f32 %v1903_v16, %v520_v39 }
  0x1b   :  { %v458_v19 = vadd.f32 %v457_v1, %v456_v55  ;;  %v63_v46 = vsel %vm36_vm0, %v59_v42, 0.0 }
  0x1c   :  { %v127_v22 = vadd.f32 %v126_v12, %v125_v60  ;;  %v523_v45 = vmul.f32 %v1967_v43, %v1967_v43  ;;  %v64_v51 = vrot.slane %v63_v46, 4 }
  0x1d   :  { %937 = vperm.xlu0 %1721, %v1864_v6   ;;  %v460_v26 = vmul.f32 0.25, %v458_v19 }
  0x1e   :  { %419 = vperm.xlu1 %1718, %v26_v17   ;;  %v1798_v17 = vmov 6   ;;  %v129_v30 = vmul.f32 0.25, %v127_v22  ;;  %v525_v53 = vcombine.high %v523_v45, %v523_v45  ;;  %v65_v60 = vadd.f32 %v64_v51, %v63_v46 }
  0x1f   :  { %v463_v32 = vcombine.low %v459_v25, %v460_v26 }
  0x20   :  { %v534_v62 = vsel %vm36_vm0, %v525_v53, 0.0  ;;  %v66_v13 = vrot.slane %v65_v60, 2 }
  0x21   :  { %1724 = vset.pattern.permute.xlu0 %v1795_v9  ;;  %v1955_v38 = vsub.f32 %v1884_v11, %v463_v32  ;;  %v535_v12 = vrot.slane %v534_v62, 4 }
  0x22   :  { %388 = vperm.xlu0 %1724, %v30_v5   ;;  %861 = vperm.xlu1 %1718, %v1871_v8   ;;  %v119_v5 = vrot.slane %v118_v59, 1  ;;  %v67_v22 = vadd.f32 %v66_v13, %v65_v60  ;;  %v1802_v13 = vmov 1985246804  }
  0x23   :  { %v466_v10 = vmul.f32 %v1955_v38, %v1955_v38 }
  0x25   :  { %v468_v44 = vcombine.high %v466_v10, %v466_v10  ;;  %v470_v47 = vsel %vm36_vm0, %v466_v10, 0.0 }
  0x26   :  { %1008 = vperm.xlu0 %1724, %v1871_v8   ;;  %1719 = vset.pattern.permute.xlu1 %v1793_v4  ;;  %v471_v54 = vrot.slane %v470_v47, 4 }
  0x27   :  { %894 = vperm.xlu1 %1719, %v1864_v6   ;;  %v477_v52 = vsel %vm36_vm0, %v468_v44, 0.0 }
  0x28   :  { %v472_v63 = vadd.f32 %v471_v54, %v470_v47 }
  0x2a   :  { %1730 = vset.pattern.permute.xlu0 %v1796_v48 }
  0x2b   :  { %1155 = vperm.xlu0 %1730, %v1871_v8   ;;  %1722 = vset.pattern.permute.xlu1 %v1792_v0 }
  0x2c   :  { %851 = vperm.xlu1 %1722, %v1934_v49  }
  0x2f   :  { %1733 = vset.pattern.permute.xlu0 %v1797_v58 }
  0x30   :  { %1018 = vperm.xlu0 %1733, %v1934_v49   ;;  %1723 = vset.pattern.permute.xlu1 %v1793_v4  ;;  %v120_v4 = vadd.f32 %v119_v5, %v118_v59  ;;  %v527_v59 = vsel %vm36_vm0, %v523_v45, 0.0 }
  0x31   :  { %890 = vperm.xlu1 %1723, %v1934_v49   ;;  %v528_v3 = vrot.slane %v527_v59, 4 }
  0x32   :  { %v128_v29 = vmul.f32 0.25, %v120_v4  ;;  %v536_v4 = vadd.f32 %v535_v12, %v534_v62 }
  0x33   :  { %v529_v20 = vadd.f32 %v528_v3, %v527_v59 }
  0x34   :  { %1734 = vset.pattern.permute.xlu0 %v1798_v17  ;;  %v132_v36 = vcombine.low %v128_v29, %v129_v30  ;;  %v537_v28 = vrot.slane %v536_v4, 2  ;;  %v68_v29 = vrot.slane %v67_v22, 1 }
  0x35   :  { %1114 = vperm.xlu0 %1734, %v1864_v6   ;;  %1725 = vset.pattern.permute.xlu1 %v1794_v7  ;;  %v530_v26 = vrot.slane %v529_v20, 2 }
  0x36   :  { %941 = vperm.xlu1 %1725, %v1871_v8   ;;  %v1958_v41 = vsub.f32 %v1895_v14, %v132_v36  ;;  %v61_v14 = vcombine.high %v59_v42, %v59_v42  ;;  %v538_v36 = vadd.f32 %v537_v28, %v536_v4  ;;  %v69_v39 = vadd.f32 %v68_v29, %v67_v22 }
  0x37   :  { %v531_v33 = vadd.f32 %v530_v26, %v529_v20 }
  0x38   :  { %v135_v11 = vmul.f32 %v1958_v41, %v1958_v41  ;;  %v70_v16 = vsel %vm36_vm0, %v61_v14, 0.0  ;;  %v539_v46 = vrot.slane %v538_v36, 1  ;;  %v77_v47 = vmul.f32 0.25, %v69_v39 }
  0x39   :  { %1110 = vperm.xlu0 %1734, %v1934_v49   ;;  %v71_v56 = vrot.slane %v70_v16, 4  ;;  %v532_v44 = vrot.slane %v531_v33, 1 }
  0x3a   :  { %1726 = vset.pattern.permute.xlu1 %v1795_v9  ;;  %v137_v50 = vcombine.high %v135_v11, %v135_v11  ;;  %v139_v55 = vsel %vm36_vm0, %v135_v11, 0.0  ;;  %v540_v54 = vadd.f32 %v539_v46, %v538_v36 }
  0x3b   :  { %1004 = vperm.xlu1 %1726, %v1864_v6   ;;  %v140_v61 = vrot.slane %v139_v55, 4  ;;  %v72_v2 = vadd.f32 %v71_v56, %v70_v16 }
  0x3c   :  { %v146_v57 = vsel %vm36_vm0, %v137_v50, 0.0 }
  0x3d   :  { %1738 = vset.pattern.permute.xlu0 %v1799_v35  ;;  %v147_v1 = vrot.slane %v146_v57, 4  ;;  %v141_v15 = vadd.f32 %v140_v61, %v139_v55  ;;  %v73_v19 = vrot.slane %v72_v2, 2  ;;  %v79_v55 = vadd.f32 1e-05, %v77_v47 }
  0x3e   :  { %1198 = vperm.xlu0 %1738, %v1871_v8   ;;  %v542_v61 = vmul.f32 0.25, %v540_v54 }
  0x3f   :  { %1727 = vset.pattern.permute.xlu1 %v1797_v58  ;;  %v478_v58 = vrot.slane %v477_v52, 4  ;;  %v148_v18 = vadd.f32 %v147_v1, %v146_v57  ;;  %v74_v25 = vadd.f32 %v73_v19, %v72_v2  ;;  %1748 = vrsqrt.f32 %v79_v55 }
  0x40   :  { %1022 = vperm.xlu1 %1727, %v1864_v6   ;;  %v544_v1 = vadd.f32 1e-05, %v542_v61  ;;  %v1801_v2 = vmov 839922192  }
  0x41   :  { %v479_v5 = vadd.f32 %v478_v58, %v477_v52  ;;  %v149_v24 = vrot.slane %v148_v18, 2  ;;  %v533_v52 = vadd.f32 %v532_v44, %v531_v33  ;;  %v93_v3 = vunpack.c.l.s4 %v1801_v2 }
  0x42   :  { %1739 = vset.pattern.permute.xlu0 %v1800_v40 }
  0x43   :  { %1061 = vperm.xlu0 %1739, %v1934_v49   ;;  %v480_v21 = vrot.slane %v479_v5, 2  ;;  %v150_v32 = vadd.f32 %v149_v24, %v148_v18  ;;  %v541_v59 = vmul.f32 0.25, %v533_v52  ;;  %v94_v19 = vunpack.c.0.s8 %v93_v3 }
  0x44   :  { %1026 = vperm.xlu1 %1727, %v1871_v8  }
  0x45   :  { %v481_v27 = vadd.f32 %v480_v21, %v479_v5  ;;  %v151_v11 = vrot.slane %v150_v32, 1 }
  0x47   :  { %1741 = vset.pattern.permute.xlu0 %v1792_v0  ;;  %v482_v34 = vrot.slane %v481_v27, 1  ;;  %v152_v16 = vadd.f32 %v151_v11, %v150_v32 }
  0x48   :  { %1728 = vset.pattern.permute.xlu1 %v1798_v17  ;;  %v473_v17 = vrot.slane %v472_v63, 2 }
  0x49   :  { %1118 = vperm.xlu1 %1728, %v1871_v8   ;;  %v483_v45 = vadd.f32 %v482_v34, %v481_v27 }
  0x4a   :  { %v474_v23 = vadd.f32 %v473_v17, %v472_v63  ;;  %v543_v63 = vadd.f32 1e-05, %v541_v59 }
  0x4b   :  { %v485_v53 = vmul.f32 0.25, %v483_v45 }
  0x4c   :  { %v475_v31 = vrot.slane %v474_v23, 1 }
  0x4d   :  { %1729 = vset.pattern.permute.xlu1 %v1796_v48  ;;  %v487_v60 = vadd.f32 1e-05, %v485_v53 }
  0x4e   :  { %1151 = vperm.xlu1 %1729, %v1864_v6   ;;  %v476_v10 = vadd.f32 %v475_v31, %v474_v23 }
  0x50   :  { %v484_v50 = vmul.f32 0.25, %v476_v10 }
  0x52   :  { %1731 = vset.pattern.permute.xlu1 %v1794_v7  ;;  %v142_v7 = vrot.slane %v141_v15, 2  ;;  %v486_v57 = vadd.f32 1e-05, %v484_v50 }
  0x53   :  { %933 = vperm.xlu1 %1731, %v1934_v49  }
  0x54   :  { %v143_v30 = vadd.f32 %v142_v7, %v141_v15  ;;  %1750 = vrsqrt.f32 %v486_v57  ;;  %v102_v15 = vunpack.c.l.s4 %v1802_v13 }
  0x56   :  { %v144_v42 = vrot.slane %v143_v30, 1  ;;  %v103_v4 = vunpack.c.0.s8 %v102_v15 }
  0x57   :  { %1732 = vset.pattern.permute.xlu1 %v1795_v9  ;;  %v75_v9 = vrot.slane %v74_v25, 1 }
  0x58   :  { %1000 = vperm.xlu1 %1732, %v1934_v49  }
  0x59   :  { %v76_v14 = vadd.f32 %v75_v9, %v74_v25 }
  0x5b   :  { %v78_v51 = vmul.f32 0.25, %v76_v14 }
  0x5c   :  { %1735 = vset.pattern.permute.xlu1 %v1800_v40  ;;  %v145_v40 = vadd.f32 %v144_v42, %v143_v30 }
  0x5d   :  { %1065 = vperm.xlu1 %1735, %v1864_v6   ;;  %v80_v58 = vadd.f32 1e-05, %v78_v51 }
  0x5e   :  { %v153_v56 = vmul.f32 0.25, %v145_v40 }
  0x5f   :  { %1752 = vrsqrt.f32 %v80_v58 }
  0x60   :  { %1754 = vrsqrt.f32 %v487_v60 }
  0x61   :  { %1069 = vperm.xlu1 %1735, %v1871_v8   ;;  %v154_v8 = vmul.f32 0.25, %v152_v16 }
  0x63   :  { %v156_v62 = vadd.f32 1e-05, %v154_v8 }
  0x65   :  { %1736 = vset.pattern.permute.xlu1 %v1796_v48  ;;  %v155_v48 = vadd.f32 1e-05, %v153_v56 }
  0x66   :  { %1147 = vperm.xlu1 %1736, %v1934_v49  }
  0x67   :  { %1756 = vrsqrt.f32 %v155_v48 }
  0x68   :  { %1758 = vrsqrt.f32 %v156_v62 }
  0x69   :  { %1760 = vrsqrt.f32 %v543_v63 }
  0x6a   :  { %1737 = vset.pattern.permute.xlu1 %v1799_v35  ;;  %1762 = vrsqrt.f32 %v544_v1  ;;  %v1749_v35 = vpop.eup %1748 }
  0x6b   :  { %1194 = vperm.xlu1 %1737, %v1864_v6   ;;  %v2757_v6 = vlaneseq  ;;  %v1751_v5 = vpop.eup %1750 }
  0x6c   :  { %v1753_v12 = vpop.eup %1752 }
  0x6d   :  { %v1755_v17 = vpop.eup %1754  ;;  %v96_v20 = vshrl.u32 %v2757_v6, 7  ;;  %v85_v22 = vcombine.low %v1749_v35, %v1753_v12 }
  0x6e   :  { %v492_v7 = vcombine.low %v1751_v5, %v1755_v17 }
  0x6f   :  { %1190 = vperm.xlu1 %1737, %v1934_v49   ;;  %v106_v25 = vsub.s32 %v103_v4, %v96_v20  ;;  %v87_v26 = vmul.f32 %v85_v22, %v1951_v37  ;;  %v2002_v32 = vsub.s32 1, %v96_v20  ;;  %v2005_v33 = vsub.s32 5, %v96_v20 }
  0x70   :  { %v494_v27 = vmul.f32 %v492_v7, %v1955_v38  ;;  %v2008_v10 = vsub.s32 0, %v96_v20  ;;  %v2010_v38 = vsub.s32 4, %v96_v20  ;;  %v2016_v46 = vsub.s32 2, %v96_v20 }
  0x71   :  { %v1757_v18 = vpop.eup %1756  ;;  %2779 = vst [vmem:[#allocation3_spill] sm:$0xff] %v2002_v32  ;;  %2780 = vst [vmem:[#allocation4_spill] sm:$0xff] %v2005_v33  ;;  %v2050_v35 = vsub.s32 7, %v96_v20  ;;  %v2052_v2 = vsub.s32 6, %v96_v20 }
  0x72   :  { %v1759_v49 = vpop.eup %1758  ;;  %2781 = vst [vmem:[#allocation5_spill] sm:$0xff] %v2008_v10  ;;  %2782 = vst [vmem:[#allocation6_spill] sm:$0xff] %v2010_v38 }
  0x73   :  { %1740 = vset.pattern.permute.xlu1 %v1792_v0  ;;  %v1761_v21 = vpop.eup %1760  ;;  %v97_v0 = vsub.s32 %v94_v19, %v96_v20  ;;  %v161_v24 = vcombine.low %v1757_v18, %v1759_v49 }
  0x74   :  { %v1763_v23 = vpop.eup %1762 }
  0x75   :  { %v549_v28 = vcombine.low %v1761_v21, %v1763_v23  ;;  %v163_v9 = vmul.f32 %v161_v24, %v1958_v41  ;;  %v2018_v41 = vsub.s32 3, %v96_v20 }
  0x77   :  { %v551_v42 = vmul.f32 %v549_v28, %v1967_v43 }
  0x81   :  { %v2000_v30 = vpop.permute.xlu1 %188 }
  0x82   :  { %v91_v29 = vpop.permute.xlu0 %90 }
  0x83   :  { %v98_v31 = vrot.slane %v91_v29, %v97_v0  ;;  %v107_v36 = vrot.slane %v91_v29, %v106_v25 }
  0x85   :  { %v100_v34 = vmul.f32 %v98_v31, %v87_v26  ;;  %v495_v39 = vmul.f32 %v494_v27, %v98_v31 }
  0x86   :  { %v167_v37 = vpop.permute.xlu0 %166  ;;  %v214_v45 = vpop.permute.xlu1 %213 }
  0x87   :  { %v2012_v11 = vadd.f32 %v107_v36, %v100_v34  ;;  %v2014_v14 = vadd.f32 %v495_v39, %v107_v36  ;;  %v174_v44 = vrot.slane %v167_v37, %v97_v0  ;;  %v183_v47 = vrot.slane %v167_v37, %v106_v25 }
  0x89   :  { %v176_v40 = vmul.f32 %v174_v44, %v163_v9  ;;  %v552_v50 = vmul.f32 %v551_v42, %v174_v44  ;;  %v334_v43 = vrot.slane %v2012_v11, %v2002_v32  ;;  %v338_v16 = vrot.slane %v2012_v11, %v2005_v33 }
  0x8a   :  { %v677_v51 = vrot.slane %v2014_v14, %v2002_v32  ;;  %v681_v52 = vrot.slane %v2014_v14, %v2005_v33  ;;  %v2028_v53 = vpop.permute.xlu0 %301  ;;  %v308_v54 = vrot.slane %v2012_v11, %v2008_v10  ;;  %v312_v55 = vrot.slane %v2012_v11, %v2010_v38  ;;  %v2040_v59 = vpop.permute.xlu1 %328 }
  0x8b   :  { %2783 = vst [vmem:[#allocation7_spill] sm:$0xff] %v2028_v53  ;;  %v2034_v56 = vadd.f32 %v183_v47, %v176_v40  ;;  %v2036_v57 = vadd.f32 %v552_v50, %v183_v47  ;;  %v344_v8 = vrot.slane %v334_v43, %v2002_v32  ;;  %v348_v58 = vrot.slane %v338_v16, %v2002_v32 }
  0x8c   :  { %2784 = vst [vmem:[#allocation8_spill] sm:$0xff] %v2040_v59  ;;  %v687_v60 = vrot.slane %v677_v51, %v2002_v32  ;;  %v691_v61 = vrot.slane %v681_v52, %v2002_v32  ;;  %v318_v48 = vrot.slane %v308_v54, %v2008_v10  ;;  %v322_v62 = vrot.slane %v312_v55, %v2008_v10 }
  0x8d   :  { %v219_v63 = vrot.slane %v2034_v56, %v2002_v32  ;;  %v223_v1 = vrot.slane %v2034_v56, %v2005_v33  ;;  %v2054_v3 = vmul.f32 %v344_v8, %v214_v45  ;;  %v2056_v5 = vmul.f32 %v348_v58, %v214_v45 }
  0x8e   :  { %v578_v12 = vrot.slane %v2036_v57, %v2002_v32  ;;  %v582_v13 = vrot.slane %v2036_v57, %v2005_v33  ;;  %v2062_v15 = vpop.permute.xlu0 %856  ;;  %v2066_v19 = vmul.f32 %v687_v60, %v214_v45  ;;  %v2068_v20 = vmul.f32 %v691_v61, %v214_v45 }
  0x8f   :  { %v229_v17 = vrot.slane %v219_v63, %v2002_v32  ;;  %v233_v18 = vrot.slane %v223_v1, %v2002_v32  ;;  %v323_v4 = vmul.f32 %v318_v48, %v2000_v30  ;;  %v324_v22 = vmul.f32 %v322_v62, %v2000_v30  ;;  %v2074_v7 = vpop.permute.xlu1 %358 }
  0x90   :  { %v588_v49 = vrot.slane %v578_v12, %v2002_v32  ;;  %v592_v21 = vrot.slane %v582_v13, %v2002_v32  ;;  %2785 = vst [vmem:[#allocation9_spill] sm:$0xff] %v2074_v7  ;;  %v2077_v23 = vmul.f32 %v318_v48, %v2028_v53  ;;  %v2080_v0 = vmul.f32 %v322_v62, %v2028_v53 }
  0x91   :  { %v655_v24 = vrot.slane %v2014_v14, %v2008_v10  ;;  %v659_v25 = vrot.slane %v2014_v14, %v2010_v38  ;;  %v234_v26 = vmul.f32 %v229_v17, %v214_v45  ;;  %v235_v27 = vmul.f32 %v233_v18, %v214_v45 }
  0x92   :  { %v2086_v28 = vmul.f32 %v588_v49, %v214_v45  ;;  %v2088_v29 = vmul.f32 %v592_v21, %v214_v45  ;;  %v2093_v34 = vmul.f32 %v344_v8, %v2040_v59  ;;  %v2096_v36 = vmul.f32 %v348_v58, %v2040_v59 }
  0x93   :  { %v665_v31 = vrot.slane %v655_v24, %v2008_v10  ;;  %v669_v9 = vrot.slane %v659_v25, %v2008_v10  ;;  %v2098_v39 = vpop.permute.xlu0 %898  ;;  %v271_v42 = vrot.slane %v2034_v56, %v2018_v41  ;;  %v275_v37 = vrot.slane %v2034_v56, %v2050_v35 }
  0x94   :  { %v622_v44 = vrot.slane %v2036_v57, %v2018_v41  ;;  %v626_v45 = vrot.slane %v2036_v57, %v2050_v35  ;;  %v2115_v50 = vmul.f32 %v687_v60, %v2040_v59  ;;  %v2118_v43 = vmul.f32 %v691_v61, %v2040_v59  ;;  %v2120_v16 = vpop.permute.xlu1 %265 }
  0x95   :  { %v2109_v47 = vmul.f32 %v665_v31, %v2000_v30  ;;  %v2112_v40 = vmul.f32 %v669_v9, %v2000_v30  ;;  %v2123_v51 = vmul.f32 %v665_v31, %v2028_v53  ;;  %v2126_v52 = vmul.f32 %v669_v9, %v2028_v53 }
  0x96   :  { %v281_v54 = vrot.slane %v271_v42, %v2018_v41  ;;  %v285_v55 = vrot.slane %v275_v37, %v2018_v41  ;;  %v195_v8 = vrot.slane %v2034_v56, %v2008_v10  ;;  %v199_v58 = vrot.slane %v2034_v56, %v2010_v38 }
  0x97   :  { %v245_v60 = vrot.slane %v2034_v56, %v2016_v46  ;;  %v249_v61 = vrot.slane %v2034_v56, %v2052_v2  ;;  %v632_v63 = vrot.slane %v622_v44, %v2018_v41  ;;  %v636_v1 = vrot.slane %v626_v45, %v2018_v41 }
  0x98   :  { %v286_v48 = vmul.f32 %v281_v54, %v2120_v16  ;;  %v287_v62 = vmul.f32 %v285_v55, %v2120_v16  ;;  %v2142_v12 = vpop.permute.xlu0 %239  ;;  %v205_v13 = vrot.slane %v195_v8, %v2008_v10  ;;  %v209_v17 = vrot.slane %v199_v58, %v2008_v10 }
  0x99   :  { %v255_v18 = vrot.slane %v245_v60, %v2016_v46  ;;  %v259_v49 = vrot.slane %v249_v61, %v2016_v46  ;;  %v637_v56 = vmul.f32 %v632_v63, %v2120_v16  ;;  %v638_v21 = vmul.f32 %v636_v1, %v2120_v16  ;;  %v2154_v31 = vpop.permute.xlu1 %292 }
  0x9a   :  { %v364_v24 = vrot.slane %v2012_v11, %v2016_v46  ;;  %v368_v25 = vrot.slane %v2012_v11, %v2052_v2  ;;  %v210_v9 = vmul.f32 %v205_v13, %v2000_v30  ;;  %v211_v42 = vmul.f32 %v209_v17, %v2000_v30 }
  0x9b   :  { %v260_v37 = vmul.f32 %v255_v18, %v2142_v12  ;;  %v261_v44 = vmul.f32 %v259_v49, %v2142_v12  ;;  %v558_v55 = vrot.slane %v2036_v57, %v2008_v10  ;;  %v562_v8 = vrot.slane %v2036_v57, %v2010_v38 }
  0x9c   :  { %v374_v45 = vrot.slane %v364_v24, %v2016_v46  ;;  %v378_v54 = vrot.slane %v368_v25, %v2016_v46  ;;  %v236_v58 = vadd.f32 %v234_v26, %v210_v9  ;;  %v237_v60 = vadd.f32 %v235_v27, %v211_v42 }
  0x9d   :  { %v600_v61 = vrot.slane %v2036_v57, %v2016_v46  ;;  %v604_v63 = vrot.slane %v2036_v57, %v2052_v2  ;;  %v353_v1 = vadd.f32 %v2054_v3, %v323_v4  ;;  %v354_v13 = vadd.f32 %v2056_v5, %v324_v22  ;;  %v2174_v49 = vpop.permute.xlu1 %419 }
  0x9e   :  { %v379_v17 = vmul.f32 %v374_v45, %v2142_v12  ;;  %v380_v18 = vmul.f32 %v378_v54, %v2142_v12  ;;  %2786 = vst [vmem:[#allocation10_spill] sm:$0xff] %v2174_v49  ;;  %v262_v24 = vadd.f32 %v260_v37, %v236_v58  ;;  %v263_v25 = vadd.f32 %v261_v44, %v237_v60  ;;  %v2184_v37 = vpop.permute.xlu0 %937 }
  0x9f   :  { %v568_v26 = vrot.slane %v558_v55, %v2008_v10  ;;  %v572_v27 = vrot.slane %v562_v8, %v2008_v10  ;;  %v381_v9 = vmul.f32 %v374_v45, %v2074_v7  ;;  %v382_v57 = vmul.f32 %v378_v54, %v2074_v7 }
  0xa0   :  { %v610_v3 = vrot.slane %v600_v61, %v2016_v46  ;;  %v614_v5 = vrot.slane %v604_v63, %v2016_v46  ;;  %v288_v4 = vadd.f32 %v286_v48, %v262_v24  ;;  %v289_v22 = vadd.f32 %v287_v62, %v263_v25 }
  0xa1   :  { %v573_v42 = vmul.f32 %v568_v26, %v2000_v30  ;;  %v574_v6 = vmul.f32 %v572_v27, %v2000_v30  ;;  %v383_v44 = vadd.f32 %v379_v17, %v353_v1  ;;  %v384_v55 = vadd.f32 %v380_v18, %v354_v13  ;;  %v2194_v60 = vpop.permute.xlu1 %861 }
  0xa2   :  { %v615_v8 = vmul.f32 %v610_v3, %v2142_v12  ;;  %v616_v45 = vmul.f32 %v614_v5, %v2142_v12  ;;  %v703_v48 = vrot.slane %v2014_v14, %v2016_v46  ;;  %v707_v62 = vrot.slane %v2014_v14, %v2052_v2  ;;  %v2214_v26 = vpop.permute.xlu0 %388 }
  0xa3   :  { %v595_v54 = vadd.f32 %v2086_v28, %v573_v42  ;;  %v596_v58 = vadd.f32 %v2088_v29, %v574_v6  ;;  %v696_v30 = vadd.f32 %v2066_v19, %v2109_v47  ;;  %v697_v61 = vadd.f32 %v2068_v20, %v2112_v40  ;;  %2787 = vst [vmem:[#allocation11_spill] sm:$0xff] %v2214_v26 }
  0xa4   :  { %v295_v63 = vadd.f32 %v2154_v31, %v288_v4  ;;  %v296_v28 = vadd.f32 %v2154_v31, %v289_v22  ;;  %v713_v29 = vrot.slane %v703_v48, %v2016_v46  ;;  %v717_v13 = vrot.slane %v707_v62, %v2016_v46 }
  0xa5   :  { %v617_v1 = vadd.f32 %v615_v8, %v595_v54  ;;  %v618_v6 = vadd.f32 %v616_v45, %v596_v58  ;;  %v355_v17 = vadd.f32 %v2093_v34, %v2077_v23  ;;  %v356_v19 = vadd.f32 %v2096_v36, %v2080_v0 }
  0xa6   :  { %297 = vst [vmem:[#allocation2] sm:$0xf] %v295_v63  ;;  %298 = vst [vmem:[#allocation2 + $0x8] sm:$0xf] %v296_v28  ;;  %v394_v20 = vrot.slane %v2012_v11, %v2018_v41  ;;  %v398_v47 = vrot.slane %v2012_v11, %v2050_v35  ;;  %v718_v24 = vmul.f32 %v713_v29, %v2142_v12  ;;  %v2216_v27 = vpop.permute.xlu1 %894 }
  0xa7   :  { %v639_v40 = vadd.f32 %v637_v56, %v617_v1  ;;  %v640_v18 = vadd.f32 %v638_v21, %v618_v6  ;;  %v719_v25 = vmul.f32 %v717_v13, %v2142_v12  ;;  %v385_v23 = vadd.f32 %v381_v9, %v355_v17 }
  0xa8   :  { %v386_v34 = vadd.f32 %v382_v57, %v356_v19  ;;  %v404_v0 = vrot.slane %v394_v20, %v2018_v41  ;;  %v408_v36 = vrot.slane %v398_v47, %v2018_v41  ;;  %v720_v3 = vmul.f32 %v713_v29, %v2074_v7 }
  0xa9   :  { %v721_v11 = vmul.f32 %v717_v13, %v2074_v7  ;;  %v641_v56 = vadd.f32 %v639_v40, %v2154_v31  ;;  %v642_v21 = vadd.f32 %v640_v18, %v2154_v31  ;;  %v722_v57 = vadd.f32 %v718_v24, %v696_v30 }
  0xaa   :  { %v409_v12 = vmul.f32 %v404_v0, %v2120_v16  ;;  %v410_v5 = vmul.f32 %v408_v36, %v2120_v16  ;;  %v411_v4 = vmul.f32 %v404_v0, %v2214_v26  ;;  %v412_v9 = vmul.f32 %v408_v36, %v2214_v26 }
  0xab   :  { %v723_v22 = vadd.f32 %v719_v25, %v697_v61  ;;  %v645_v42 = vrot.slane %v641_v56, 4  ;;  %v646_v8 = vrot.slane %v642_v21, 4  ;;  %v2228_v62 = vpop.permute.xlu1 %851  ;;  %v698_v63 = vadd.f32 %v2115_v50, %v2123_v51 }
  0xac   :  { %v413_v45 = vadd.f32 %v409_v12, %v383_v44  ;;  %v414_v54 = vadd.f32 %v410_v5, %v384_v55  ;;  %v415_v58 = vadd.f32 %v411_v4, %v385_v23  ;;  %v416_v48 = vadd.f32 %v412_v9, %v386_v34 }
  0xad   :  { %649 = vst [vmem:[#allocation2] sm:$0xf0] %v645_v42  ;;  %650 = vst [vmem:[#allocation2 + $0x8] sm:$0xf0] %v646_v8  ;;  %v699_v28 = vadd.f32 %v2118_v43, %v2126_v52  ;;  %v729_v30 = vrot.slane %v2014_v14, %v2018_v41  ;;  %v733_v61 = vrot.slane %v2014_v14, %v2050_v35 }
  0xae   :  { %v422_v44 = vadd.f32 %v413_v45, %v2154_v31  ;;  %v423_v55 = vadd.f32 %v414_v54, %v2154_v31  ;;  %v424_v1 = vadd.f32 %v2174_v49, %v415_v58  ;;  %v425_v6 = vadd.f32 %v2174_v49, %v416_v48  ;;  %v2276_v45 = vld [vmem:[%s2755_s5] sm:$0xff]  ;;  %s1805_s5 = smov 17  }
  0xaf   :  { %v724_v29 = vadd.f32 %v720_v3, %v698_v63  ;;  %v725_v13 = vadd.f32 %v721_v11, %v699_v28  ;;  %v739_v50 = vrot.slane %v729_v30, %v2018_v41  ;;  %v743_v43 = vrot.slane %v733_v61, %v2018_v41 }
  0xb0   :  { %v430_v51 = vrot.slane %v422_v44, 4  ;;  %v431_v52 = vrot.slane %v424_v1, 4  ;;  %v433_v17 = vrot.slane %v423_v55, 4  ;;  %v434_v19 = vrot.slane %v425_v6, 4  ;;  %v2248_v18 = vpop.permute.xlu1 %890 }
  0xb1   :  { %v744_v14 = vmul.f32 %v739_v50, %v2120_v16  ;;  %v745_v20 = vmul.f32 %v743_v43, %v2120_v16  ;;  %v746_v47 = vmul.f32 %v739_v50, %v2214_v26  ;;  %v747_v40 = vmul.f32 %v743_v43, %v2214_v26 }
  0xb2   :  { %v2251_v24 = vsel %vm36_vm0, %v430_v51, %v431_v52  ;;  %v2254_v25 = vsel %vm36_vm0, %v433_v17, %v434_v19  ;;  %v787_v54 = vrot.slane %v2276_v45, %v2010_v38  ;;  %v783_v48 = vrot.slane %v2276_v45, %v2008_v10 }
  0xb3   :  { %v748_v23 = vadd.f32 %v744_v14, %v722_v57  ;;  %v749_v34 = vadd.f32 %v745_v20, %v723_v22  ;;  %v750_v0 = vadd.f32 %v746_v47, %v724_v29  ;;  %v751_v36 = vadd.f32 %v747_v40, %v725_v13 }
  0xb4   :  { %v2256_v3 = vld [vmem:[#allocation2 + $0x8] sm:$0xff]  ;;  %v2258_v11 = vld [vmem:[#allocation2] sm:$0xff]  ;;  %v797_v30 = vrot.slane %v787_v54, %v2008_v10  ;;  %v811_v61 = vrot.slane %v2276_v45, %v2005_v33  ;;  %v793_v44 = vrot.slane %v783_v48, %v2008_v10  ;;  %v807_v1 = vrot.slane %v2276_v45, %v2002_v32 }
  0xb5   :  { %v752_v16 = vadd.f32 %v748_v23, %v2154_v31  ;;  %v753_v56 = vadd.f32 %v749_v34, %v2154_v31  ;;  %v754_v21 = vadd.f32 %v750_v0, %v2174_v49  ;;  %v755_v12 = vadd.f32 %v751_v36, %v2174_v49  ;;  %876 = vrot.lane.b32.xlu0 %v2256_v3, %s1803_s4  ;;  %v2266_v5 = vpop.permute.xlu1 %941 }
  0xb6   :  { %870 = vrot.lane.b32.xlu1 %v2258_v11, %s1803_s4  ;;  %v799_v13 = vmul.f32 %v797_v30, %v2256_v3  ;;  %v821_v50 = vrot.slane %v811_v61, %v2002_v32  ;;  %v798_v43 = vmul.f32 %v793_v44, %v2258_v11  ;;  %v817_v51 = vrot.slane %v807_v1, %v2002_v32 }
  0xb7   :  { %v760_v4 = vrot.slane %v752_v16, 4  ;;  %v761_v9 = vrot.slane %v754_v21, 4  ;;  %v763_v57 = vrot.slane %v753_v56, 4  ;;  %v764_v22 = vrot.slane %v755_v12, 4 }
  0xb8   :  { %v823_v52 = vmul.f32 %v821_v50, %v2256_v3  ;;  %v822_v17 = vmul.f32 %v817_v51, %v2258_v11  ;;  %v801_v19 = vmul.f32 %v797_v30, %v2254_v25  ;;  %v800_v20 = vmul.f32 %v793_v44, %v2251_v24 }
  0xb9   :  { %v762_v42 = vsel %vm36_vm0, %v760_v4, %v761_v9  ;;  %v765_v8 = vsel %vm36_vm0, %v763_v57, %v764_v22  ;;  %872 = vrot.lane.b32.xlu0 %v2251_v24, %s1803_s4  ;;  %v824_v34 = vmul.f32 %v817_v51, %v2251_v24  ;;  %v825_v0 = vmul.f32 %v821_v50, %v2254_v25 }
  0xba   :  { %874 = vrot.lane.b32.xlu1 %v762_v42, %s1803_s4  ;;  %v2271_v31 = vpop.permute.xlu1 %1004  ;;  %v826_v14 = vmul.f32 %v817_v51, %v762_v42  ;;  %v827_v47 = vmul.f32 %v821_v50, %v765_v8  ;;  %v802_v40 = vmul.f32 %v793_v44, %v762_v42  ;;  %v803_v23 = vmul.f32 %v797_v30, %v765_v8 }
  0xbb   :  { %v2791_v61 = vlaneseq }
  0xbd   :  { %878 = vrot.lane.b32.xlu0 %v2254_v25, %s1803_s4  ;;  %v2355_v44 = vand.u32 127, %v2791_v61 }
  0xbe   :  { %880 = vrot.lane.b32.xlu1 %v765_v8, %s1803_s4 }
  0xbf   :  { %v1023_v58 = vpop.permute.xlu1 %1022  ;;  %vm882_vm1 = vcmp.lt.s32.totalorder %v2355_v44, 16  ;;  %vm1139_vm2 = vcmp.lt.s32.totalorder %v2355_v44, 112  ;;  %vm842_vm3 = vcmp.lt.s32.totalorder %v2355_v44, 17  ;;  %vm925_vm4 = vcmp.lt.s32.totalorder %v2355_v44, 15 }
  0xc0   :  { %v2285_v63 = vmul.f32 %v1023_v58, %v2251_v24  ;;  %v2288_v28 = vmul.f32 %v1023_v58, %v2254_v25  ;;  %vm992_vm5 = vcmp.lt.s32.totalorder %v2355_v44, 1  ;;  %vm1053_vm6 = vcmp.lt.s32.totalorder %v2355_v44, 127 }
  0xc1   :  { %1131 = vrot.lane.b32.xlu0 %v762_v42, %s1804_s23  ;;  %vm1102_vm7 = vcmp.lt.s32.totalorder %v2355_v44, 113  ;;  %vm1182_vm8 = vcmp.lt.s32.totalorder %v2355_v44, 111 }
  0xc2   :  { %1129 = vrot.lane.b32.xlu1 %v2251_v24, %s1804_s23 }
  0xc3   :  { %v1027_v55 = vpop.permute.xlu1 %1026 }
  0xc4   :  { %v2299_v6 = vmul.f32 %v1027_v55, %v762_v42  ;;  %v2301_v29 = vmul.f32 %v1027_v55, %v765_v8 }
  0xc5   :  { %1137 = vrot.lane.b32.xlu0 %v765_v8, %s1804_s23  ;;  %v27_v8 = vld [vmem:[%s2751_s2 + $0x20] sm:$0xff] }
  0xc6   :  { %1135 = vrot.lane.b32.xlu1 %v2254_v25, %s1804_s23  ;;  %v2323_v25 = vpop.permute.xlu0 %1008 }
  0xc8   :  { %v2315_v36 = vpop.permute.xlu1 %1118 }
  0xc9   :  { %834 = vrot.lane.b32.xlu0 %v799_v13, %s1805_s5 }
  0xca   :  { %828 = vrot.lane.b32.xlu1 %v798_v43, %s1805_s5  ;;  %v2327_v21 = vpop.permute.xlu0 %1155 }
  0xcd   :  { %919 = vrot.lane.b32.xlu0 %v823_v52, %s1806_s24  ;;  %v2317_v16 = vpop.permute.xlu1 %1151 }
  0xce   :  { %913 = vrot.lane.b32.xlu1 %v822_v17, %s1806_s24  ;;  %v2333_v4 = vpop.permute.xlu0 %1018 }
  0xd1   :  { %836 = vrot.lane.b32.xlu0 %v801_v19, %s1805_s5 }
  0xd2   :  { %980 = vrot.lane.b32.xlu1 %v798_v43, %s1807_s25  ;;  %v2321_v24 = vpop.permute.xlu1 %933  ;;  %v2335_v9 = vpop.permute.xlu0 %1114 }
  0xd5   :  { %917 = vrot.lane.b32.xlu0 %v826_v14, %s1806_s24 }
  0xd6   :  { %830 = vrot.lane.b32.xlu1 %v800_v20, %s1805_s5  ;;  %v2339_v22 = vpop.permute.xlu0 %1110 }
  0xd7   :  { %v2325_v56 = vpop.permute.xlu1 %1000  ;;  %2788 = vst [vmem:[#allocation12_spill] sm:$0xff] %v2339_v22 }
  0xd9   :  { %923 = vrot.lane.b32.xlu0 %v827_v47, %s1806_s24 }
  0xda   :  { %832 = vrot.lane.b32.xlu1 %v802_v40, %s1805_s5  ;;  %v2346_v54 = vpop.permute.xlu0 %1198 }
  0xdc   :  { %v2331_v12 = vpop.permute.xlu1 %1065 }
  0xdd   :  { %984 = vrot.lane.b32.xlu0 %v802_v40, %s1807_s25 }
  0xde   :  { %838 = vrot.lane.b32.xlu1 %v803_v23, %s1805_s5  ;;  %v2350_v48 = vpop.permute.xlu0 %1061 }
  0xe0   :  { %v2337_v57 = vpop.permute.xlu1 %1069 }
  0xe1   :  { %990 = vrot.lane.b32.xlu0 %v803_v23, %s1807_s25 }
  0xe2   :  { %915 = vrot.lane.b32.xlu1 %v824_v34, %s1806_s24 }
  0xe5   :  { %1094 = vrot.lane.b32.xlu0 %v802_v40, %s1808_s26  ;;  %v2341_v42 = vpop.permute.xlu1 %1147 }
  0xe6   :  { %921 = vrot.lane.b32.xlu1 %v825_v0, %s1806_s24  ;;  %2789 = vst [vmem:[#allocation13_spill] sm:$0xff] %v2341_v42 }
  0xe9   :  { %1100 = vrot.lane.b32.xlu0 %v803_v23, %s1808_s26 }
  0xea   :  { %982 = vrot.lane.b32.xlu1 %v800_v20, %s1807_s25  ;;  %v2348_v58 = vpop.permute.xlu1 %1194 }
  0xed   :  { %986 = vrot.lane.b32.xlu0 %v799_v13, %s1807_s25 }
  0xee   :  { %988 = vrot.lane.b32.xlu1 %v801_v19, %s1807_s25  ;;  %v2352_v30 = vpop.permute.xlu1 %1190 }
  0xef   :  { %2790 = vst [vmem:[#allocation14_spill] sm:$0xff] %v2352_v30 }
  0xf1   :  { %1045 = vrot.lane.b32.xlu0 %v826_v14, %s1809_s27 }
  0xf2   :  { %1092 = vrot.lane.b32.xlu1 %v800_v20, %s1808_s26 }
  0xf5   :  { %1051 = vrot.lane.b32.xlu0 %v827_v47, %s1809_s27 }
  0xf6   :  { %1098 = vrot.lane.b32.xlu1 %v801_v19, %s1808_s26 }
  0xf9   :  { %1096 = vrot.lane.b32.xlu0 %v799_v13, %s1808_s26 }
  0xfa   :  { %1043 = vrot.lane.b32.xlu1 %v824_v34, %s1809_s27 }
  0xfd   :  { %1133 = vrot.lane.b32.xlu0 %v2256_v3, %s1804_s23 }
  0xfe   :  { %1049 = vrot.lane.b32.xlu1 %v825_v0, %s1809_s27 }
 0x101   :  { %1174 = vrot.lane.b32.xlu0 %v826_v14, %s1810_s28 }
 0x102   :  { %1090 = vrot.lane.b32.xlu1 %v798_v43, %s1808_s26 }
 0x105   :  { %1180 = vrot.lane.b32.xlu0 %v827_v47, %s1810_s28 }
 0x106   :  { %1127 = vrot.lane.b32.xlu1 %v2258_v11, %s1804_s23 }
 0x109   :  { %1047 = vrot.lane.b32.xlu0 %v823_v52, %s1809_s27 }
 0x10a   :  { %1172 = vrot.lane.b32.xlu1 %v824_v34, %s1810_s28 }
 0x10d   :  { %1176 = vrot.lane.b32.xlu0 %v823_v52, %s1810_s28 }
 0x10e   :  { %1178 = vrot.lane.b32.xlu1 %v825_v0, %s1810_s28 }
 0x112   :  { %1041 = vrot.lane.b32.xlu1 %v822_v17, %s1809_s27 }
 0x116   :  { %1170 = vrot.lane.b32.xlu1 %v822_v17, %s1810_s28 }
 0x11a   :  { %1249 = vperm.xlu1 %1740, %v27_v8  }
 0x127   :  { %v877_v55 = vpop.permute.xlu0 %876 }
 0x128   :  { %v871_v1 = vpop.permute.xlu1 %870 }
 0x129   :  { %v883_v13 = vsel %vm882_vm1, %v871_v1, %v877_v55  ;;  %v886_v50 = vsel %vm882_vm1, %v877_v55, %v871_v1 }
 0x12b   :  { %v873_v43 = vpop.permute.xlu0 %872 }
 0x12c   :  { %v875_v51 = vpop.permute.xlu1 %874 }
 0x12f   :  { %v879_v52 = vpop.permute.xlu0 %878 }
 0x130   :  { %v881_v17 = vpop.permute.xlu1 %880  ;;  %v2358_v19 = vsel %vm882_vm1, %v873_v43, %v879_v52  ;;  %v2360_v14 = vsel %vm882_vm1, %v879_v52, %v873_v43 }
 0x131   :  { %v885_v20 = vsel %vm882_vm1, %v875_v51, %v881_v17  ;;  %v888_v47 = vsel %vm882_vm1, %v881_v17, %v875_v51 }
 0x132   :  { %v905_v30 = vmul.f32 %v2098_v39, %v888_v47  ;;  %v906_v22 = vmul.f32 %v2098_v39, %v885_v20 }
 0x133   :  { %v1132_v40 = vpop.permute.xlu0 %1131 }
 0x134   :  { %v1130_v23 = vpop.permute.xlu1 %1129 }
 0x137   :  { %v1138_v34 = vpop.permute.xlu0 %1137 }
 0x138   :  { %v1136_v0 = vpop.permute.xlu1 %1135  ;;  %v2365_v8 = vsel %vm1139_vm2, %v1132_v40, %v1138_v34  ;;  %v2369_v61 = vsel %vm1139_vm2, %v1138_v34, %v1132_v40  ;;  %v901_v40 = vmul.f32 %v2248_v18, %v886_v50  ;;  %v902_v34 = vmul.f32 %v2248_v18, %v883_v13 }
 0x139   :  { %v2373_v55 = vsel %vm1139_vm2, %v1130_v23, %v1136_v0  ;;  %v2377_v1 = vsel %vm1139_vm2, %v1136_v0, %v1130_v23 }
 0x13b   :  { %v835_v43 = vpop.permute.xlu0 %834 }
 0x13c   :  { %v829_v51 = vpop.permute.xlu1 %828 }
 0x13d   :  { %v843_v52 = vsel %vm842_vm3, %v829_v51, %v835_v43  ;;  %v846_v17 = vsel %vm842_vm3, %v835_v43, %v829_v51 }
 0x13e   :  { %v864_v26 = vmul.f32 %v2228_v62, %v846_v17  ;;  %v865_v23 = vmul.f32 %v2228_v62, %v843_v52 }
 0x13f   :  { %v920_v0 = vpop.permute.xlu0 %919 }
 0x140   :  { %v907_v7 = vadd.f32 %v901_v40, %v864_v26  ;;  %v908_v59 = vadd.f32 %v902_v34, %v865_v23  ;;  %v914_v53 = vpop.permute.xlu1 %913 }
 0x141   :  { %v926_v33 = vsel %vm925_vm4, %v914_v53, %v920_v0  ;;  %v929_v43 = vsel %vm925_vm4, %v920_v0, %v914_v53 }
 0x142   :  { %v944_v51 = vmul.f32 %v2321_v24, %v929_v43  ;;  %v945_v50 = vmul.f32 %v2321_v24, %v926_v33 }
 0x143   :  { %v837_v38 = vpop.permute.xlu0 %836 }
 0x144   :  { %v2395_v18 = vadd.f32 %v944_v51, %v907_v7  ;;  %v2397_v13 = vadd.f32 %v945_v50, %v908_v59  ;;  %v981_v62 = vpop.permute.xlu1 %980  ;;  %v1029_v51 = vmul.f32 %v2333_v4, %v2258_v11  ;;  %v1030_v50 = vmul.f32 %v2333_v4, %v2256_v3 }
 0x146   :  { %2792 = vst [vmem:[#allocation15_spill] sm:$0xff] %v2395_v18  ;;  %2793 = vst [vmem:[#allocation16_spill] sm:$0xff] %v2397_v13 }
 0x147   :  { %v918_v52 = vpop.permute.xlu0 %917 }
 0x148   :  { %v831_v26 = vpop.permute.xlu1 %830 }
 0x14b   :  { %v924_v17 = vpop.permute.xlu0 %923 }
 0x14c   :  { %v833_v40 = vpop.permute.xlu1 %832 }
 0x14f   :  { %v985_v34 = vpop.permute.xlu0 %984 }
 0x150   :  { %v839_v23 = vpop.permute.xlu1 %838 }
 0x151   :  { %v845_v33 = vsel %vm842_vm3, %v833_v40, %v839_v23  ;;  %v848_v7 = vsel %vm842_vm3, %v839_v23, %v833_v40  ;;  %v928_v23 = vsel %vm925_vm4, %v918_v52, %v924_v17 }
 0x152   :  { %v868_v0 = vmul.f32 %v2194_v60, %v848_v7  ;;  %v869_v43 = vmul.f32 %v2194_v60, %v845_v33  ;;  %v931_v7 = vsel %vm925_vm4, %v924_v17, %v918_v52  ;;  %v959_v52 = vrot.slane %v2276_v45, %v2016_v46 }
 0x153   :  { %v991_v10 = vpop.permute.xlu0 %990  ;;  %v963_v17 = vrot.slane %v2276_v45, %v2052_v2  ;;  %v948_v18 = vmul.f32 %v2266_v5, %v931_v7 }
 0x154   :  { %v916_v32 = vpop.permute.xlu1 %915  ;;  %v995_v3 = vsel %vm992_vm5, %v985_v34, %v991_v10  ;;  %v998_v39 = vsel %vm992_vm5, %v991_v10, %v985_v34  ;;  %v911_v47 = vadd.f32 %v905_v30, %v868_v0  ;;  %v912_v42 = vadd.f32 %v906_v22, %v869_v43 }
 0x155   :  { %v949_v10 = vmul.f32 %v2266_v5, %v928_v23  ;;  %v1015_v34 = vmul.f32 %v2323_v25, %v998_v39  ;;  %v2446_v43 = vrot.slane %v959_v52, %v2016_v46  ;;  %v847_v5 = vsel %vm842_vm3, %v837_v38, %v831_v26 }
 0x156   :  { %v954_v30 = vadd.f32 %v948_v18, %v911_v47 }
 0x157   :  { %v2399_v49 = vpop.permute.xlu0 %1094  ;;  %v955_v0 = vadd.f32 %v949_v10, %v912_v42 }
 0x158   :  { %v922_v53 = vpop.permute.xlu1 %921  ;;  %v978_v39 = vmul.f32 %v2446_v43, %v954_v30 }
 0x15b   :  { %v2405_v59 = vpop.permute.xlu0 %1100 }
 0x15c   :  { %v983_v24 = vpop.permute.xlu1 %982 }
 0x15f   :  { %v987_v40 = vpop.permute.xlu0 %986 }
 0x160   :  { %v993_v60 = vsel %vm992_vm5, %v981_v62, %v987_v40  ;;  %v996_v11 = vsel %vm992_vm5, %v987_v40, %v981_v62  ;;  %v989_v33 = vpop.permute.xlu1 %988 }
 0x161   :  { %v1011_v4 = vmul.f32 %v2325_v56, %v996_v11  ;;  %v1012_v20 = vmul.f32 %v2325_v56, %v993_v60  ;;  %v1016_v56 = vmul.f32 %v2323_v25, %v995_v3  ;;  %v1039_v25 = vadd.f32 %v2299_v6, %v1015_v34 }
 0x162   :  { %v927_v11 = vsel %vm925_vm4, %v916_v32, %v922_v53  ;;  %v930_v3 = vsel %vm925_vm4, %v922_v53, %v916_v32 }
 0x163   :  { %v2434_v62 = vadd.f32 %v1029_v51, %v1011_v4  ;;  %v2436_v40 = vadd.f32 %v1030_v50, %v1012_v20  ;;  %v1046_v13 = vpop.permute.xlu0 %1045  ;;  %v2449_v51 = vrot.slane %v963_v17, %v2016_v46  ;;  %v844_v50 = vsel %vm842_vm3, %v831_v26, %v837_v38 }
 0x164   :  { %v2442_v22 = vpop.permute.xlu1 %1092  ;;  %v1040_v7 = vadd.f32 %v2301_v29, %v1016_v56  ;;  %v866_v29 = vmul.f32 %v2062_v15, %v847_v5  ;;  %v867_v26 = vmul.f32 %v2062_v15, %v844_v50  ;;  %v994_v4 = vsel %vm992_vm5, %v983_v24, %v989_v33 }
 0x165   :  { %v997_v20 = vsel %vm992_vm5, %v989_v33, %v983_v24  ;;  %v904_v15 = vmul.f32 %v2216_v27, %v2358_v19  ;;  %v946_v52 = vmul.f32 %v2184_v37, %v930_v3  ;;  %v947_v17 = vmul.f32 %v2184_v37, %v927_v11 }
 0x166   :  { %v1013_v30 = vmul.f32 %v2271_v31, %v997_v20  ;;  %v1105_v37 = vsel %vm1102_vm7, %v2399_v49, %v2405_v59  ;;  %v1216_v3 = vrot.slane %v2276_v45, %v2018_v41 }
 0x167   :  { %v1052_v23 = vpop.permute.xlu0 %1051  ;;  %v910_v33 = vadd.f32 %v904_v15, %v867_v26 }
 0x168   :  { %v1056_v42 = vsel %vm1053_vm6, %v1046_v13, %v1052_v23  ;;  %v1059_v18 = vsel %vm1053_vm6, %v1052_v23, %v1046_v13  ;;  %v2461_v60 = vpop.permute.xlu1 %1098  ;;  %v979_v13 = vmul.f32 %v2449_v51, %v955_v0  ;;  %v1014_v0 = vmul.f32 %v2271_v31, %v994_v4 }
 0x169   :  { %v1076_v38 = vmul.f32 %v2337_v57, %v1056_v42  ;;  %v1077_v6 = vmul.f32 %v2337_v57, %v1059_v18  ;;  %v903_v57 = vmul.f32 %v2216_v27, %v2360_v14  ;;  %v953_v5 = vadd.f32 %v947_v17, %v910_v33 }
 0x16a   :  { %v1108_v27 = vsel %vm1102_vm7, %v2405_v59, %v2399_v49  ;;  %v1220_v49 = vrot.slane %v2276_v45, %v2050_v35  ;;  %v1163_v45 = vmul.f32 %v2327_v21, %v2369_v61  ;;  %v2518_v20 = vrot.slane %v1216_v3, %v2018_v41 }
 0x16b   :  { %v1082_v47 = vadd.f32 %v1076_v38, %v1039_v25  ;;  %v1083_v32 = vadd.f32 %v1077_v6, %v1040_v7  ;;  %v2477_v53 = vpop.permute.xlu0 %1096  ;;  %v909_v24 = vadd.f32 %v903_v57, %v866_v29  ;;  %v1037_v25 = vadd.f32 %v2285_v63, %v1013_v30 }
 0x16c   :  { %v1044_v10 = vpop.permute.xlu1 %1043  ;;  %v1038_v7 = vadd.f32 %v2288_v28, %v1014_v0  ;;  %v977_v38 = vmul.f32 %v2449_v51, %v953_v5  ;;  %v1125_v28 = vmul.f32 %v2315_v36, %v1105_v37  ;;  %v1126_v26 = vmul.f32 %v2315_v36, %v1108_v27 }
 0x16d   :  { %v1088_v34 = vadd.f32 %v1082_v47, %v978_v39  ;;  %v1089_v56 = vadd.f32 %v1083_v32, %v979_v13  ;;  %v952_v14 = vadd.f32 %v946_v52, %v909_v24  ;;  %v1162_v13 = vmul.f32 %v2327_v21, %v2365_v8 }
 0x16e   :  { %v2521_v47 = vrot.slane %v1220_v49, %v2018_v41  ;;  %v1169_v52 = vadd.f32 %v1163_v45, %v1126_v26  ;;  %v1104_v61 = vsel %vm1102_vm7, %v2442_v22, %v2461_v60  ;;  %v1107_v17 = vsel %vm1102_vm7, %v2461_v60, %v2442_v22 }
 0x16f   :  { %v1134_v50 = vpop.permute.xlu0 %1133  ;;  %v976_v59 = vmul.f32 %v2446_v43, %v952_v14  ;;  %v1168_v15 = vadd.f32 %v1162_v13, %v1125_v28  ;;  %v1123_v14 = vmul.f32 %v2335_v9, %v1104_v61  ;;  %v1160_v37 = vmul.f32 %v2317_v16, %v2373_v55  ;;  %v2795_v28 = vld [vmem:[#allocation16_spill] sm:$0xff] }
 0x170   :  { %v1050_v23 = vpop.permute.xlu1 %1049  ;;  %v1161_v27 = vmul.f32 %v2317_v16, %v2377_v1 }
 0x171   :  { %v1055_v19 = vsel %vm1053_vm6, %v1044_v10, %v1050_v23  ;;  %v1058_v31 = vsel %vm1053_vm6, %v1050_v23, %v1044_v10 }
 0x172   :  { %v1074_v42 = vmul.f32 %v2331_v12, %v1055_v19  ;;  %v1075_v18 = vmul.f32 %v2331_v12, %v1058_v31  ;;  %v1166_v31 = vadd.f32 %v1160_v37, %v1123_v14 }
 0x173   :  { %v1175_v11 = vpop.permute.xlu0 %1174 }
 0x174   :  { %v1080_v6 = vadd.f32 %v1074_v42, %v1037_v25  ;;  %v1081_v29 = vadd.f32 %v1075_v18, %v1038_v7  ;;  %v1091_v63 = vpop.permute.xlu1 %1090 }
 0x175   :  { %v1103_v18 = vsel %vm1102_vm7, %v1091_v63, %v2477_v53 }
 0x176   :  { %v1086_v12 = vadd.f32 %v1080_v6, %v976_v59  ;;  %v1087_v39 = vadd.f32 %v1081_v29, %v977_v38  ;;  %v2794_v6 = vld [vmem:[#allocation15_spill] sm:$0xff] }
 0x177   :  { %v1181_v4 = vpop.permute.xlu0 %1180  ;;  %v974_v29 = vmul.f32 %v2446_v43, %v2794_v6 }
 0x178   :  { %v1185_v36 = vsel %vm1182_vm8, %v1175_v11, %v1181_v4  ;;  %v1188_v32 = vsel %vm1182_vm8, %v1181_v4, %v1175_v11  ;;  %v1128_v57 = vpop.permute.xlu1 %1127  ;;  %v1106_v11 = vsel %vm1102_vm7, %v2477_v53, %v1091_v63  ;;  %v975_v53 = vmul.f32 %v2449_v51, %v2795_v28  ;;  %v2796_v63 = vld [vmem:[#allocation13_spill] sm:$0xff] }
 0x179   :  { %v1205_v8 = vmul.f32 %v2346_v54, %v1185_v36  ;;  %v1206_v21 = vmul.f32 %v2346_v54, %v1188_v32  ;;  %v1124_v54 = vmul.f32 %v2335_v9, %v1107_v17  ;;  %v1140_v55 = vsel %vm1139_vm2, %v1128_v57, %v1134_v50  ;;  %v2798_v17 = vld [vmem:[#allocation14_spill] sm:$0xff] }
 0x17a   :  { %v1143_v16 = vsel %vm1139_vm2, %v1134_v50, %v1128_v57  ;;  %v1158_v26 = vmul.f32 %v2796_v63, %v1140_v55 }
 0x17b   :  { %v1211_v10 = vadd.f32 %v1205_v8, %v1168_v15  ;;  %v1212_v24 = vadd.f32 %v1206_v21, %v1169_v52  ;;  %v1167_v25 = vadd.f32 %v1161_v27, %v1124_v54  ;;  %v1048_v7 = vpop.permute.xlu0 %1047  ;;  %v1159_v13 = vmul.f32 %v2796_v63, %v1143_v16  ;;  %v2797_v52 = vld [vmem:[#allocation12_spill] sm:$0xff]  ;;  %v2799_v54 = vld [vmem:[#allocation10_spill] sm:$0xff] }
 0x17c   :  { %v1173_v33 = vpop.permute.xlu1 %1172  ;;  %v1122_v8 = vmul.f32 %v2797_v52, %v1106_v11  ;;  %v1243_v37 = vrot.slane %v2799_v54, 4 }
 0x17d   :  { %v1235_v30 = vmul.f32 %v2518_v20, %v1211_v10  ;;  %v1236_v0 = vmul.f32 %v2521_v47, %v1212_v24 }
 0x17e   :  { %v1165_v24 = vadd.f32 %v1159_v13, %v1122_v8 }
 0x17f   :  { %v1241_v5 = vadd.f32 %v1235_v30, %v1088_v34  ;;  %v1242_v23 = vadd.f32 %v1236_v0, %v1089_v56  ;;  %v1177_v45 = vpop.permute.xlu0 %1176 }
 0x180   :  { %v1179_v22 = vpop.permute.xlu1 %1178 }
 0x181   :  { %v1184_v60 = vsel %vm1182_vm8, %v1173_v33, %v1179_v22  ;;  %v1187_v19 = vsel %vm1182_vm8, %v1179_v22, %v1173_v33 }
 0x182   :  { %v1203_v9 = vmul.f32 %v2348_v58, %v1184_v60  ;;  %v1204_v34 = vmul.f32 %v2348_v58, %v1187_v19 }
 0x184   :  { %v1209_v1 = vadd.f32 %v1203_v9, %v1166_v31  ;;  %v1210_v56 = vadd.f32 %v1204_v34, %v1167_v25  ;;  %v1042_v42 = vpop.permute.xlu1 %1041 }
 0x185   :  { %v1054_v58 = vsel %vm1053_vm6, %v1042_v42, %v1048_v7  ;;  %v1057_v3 = vsel %vm1053_vm6, %v1048_v7, %v1042_v42 }
 0x186   :  { %v1233_v49 = vmul.f32 %v2518_v20, %v1209_v1  ;;  %v1234_v50 = vmul.f32 %v2521_v47, %v1210_v56  ;;  %v1072_v59 = vmul.f32 %v2350_v48, %v1054_v58  ;;  %v1073_v38 = vmul.f32 %v2350_v48, %v1057_v3 }
 0x187   :  { %v1121_v48 = vmul.f32 %v2797_v52, %v1103_v18 }
 0x188   :  { %v1078_v4 = vadd.f32 %v1072_v59, %v2434_v62  ;;  %v1079_v36 = vadd.f32 %v1073_v38, %v2436_v40  ;;  %v1171_v32 = vpop.permute.xlu1 %1170  ;;  %v1239_v57 = vadd.f32 %v1233_v49, %v1086_v12  ;;  %v1240_v15 = vadd.f32 %v1234_v50, %v1087_v39 }
 0x189   :  { %v1183_v43 = vsel %vm1182_vm8, %v1171_v32, %v1177_v45  ;;  %v1186_v51 = vsel %vm1182_vm8, %v1177_v45, %v1171_v32  ;;  %v1164_v40 = vadd.f32 %v1158_v26, %v1121_v48 }
 0x18a   :  { %v1084_v21 = vadd.f32 %v1078_v4, %v974_v29  ;;  %v1085_v61 = vadd.f32 %v1079_v36, %v975_v53  ;;  %v1201_v10 = vmul.f32 %v2798_v17, %v1183_v43  ;;  %v1202_v62 = vmul.f32 %v2798_v17, %v1186_v51  ;;  %v2800_v51 = vld [vmem:[#allocation3_spill] sm:$0xff] }
 0x18c   :  { %v1207_v12 = vadd.f32 %v1201_v10, %v1164_v40  ;;  %v1208_v39 = vadd.f32 %v1202_v62, %v1165_v24  ;;  %v2801_v24 = vld [vmem:[#allocation5_spill] sm:$0xff] }
 0x18e   :  { %v1231_v33 = vmul.f32 %v2518_v20, %v1207_v12  ;;  %v1232_v30 = vmul.f32 %v2521_v47, %v1208_v39 }
 0x190   :  { %v1237_v0 = vadd.f32 %v1231_v33, %v1084_v21  ;;  %v1238_v14 = vadd.f32 %v1232_v30, %v1085_v61 }
 0x192   :  { %v1245_v27 = vadd.f32 %v1243_v37, %v1237_v0  ;;  %v1246_v22 = vadd.f32 %v1243_v37, %v1238_v14  ;;  %v2597_v20 = vadd.f32 %v1237_v0, %v2799_v54  ;;  %v2600_v47 = vadd.f32 %v1238_v14, %v2799_v54 }
 0x194   :  { %v1254_v7 = vmul.f32 %v1245_v27, %v1245_v27  ;;  %v1255_v9 = vmul.f32 %v1246_v22, %v1246_v22  ;;  %v1474_v49 = vmul.f32 %v2597_v20, %v2597_v20  ;;  %v1475_v50 = vmul.f32 %v2600_v47, %v2600_v47 }
 0x196   :  { %v1256_v58 = vsel %vm36_vm0, %v1254_v7, 0.0  ;;  %v1257_v3 = vsel %vm36_vm0, %v1255_v9, 0.0  ;;  %v1477_v38 = vsel %vm1476_vm9, %v1474_v49, 0.0  ;;  %v1478_v6 = vsel %vm1476_vm9, %v1475_v50, 0.0 }
 0x197   :  { %v1258_v59 = vadd.f32 %v1257_v3, %v1256_v58  ;;  %v1479_v29 = vadd.f32 %v1478_v6, %v1477_v38 }
 0x199   :  { %v1250_v44 = vpop.permute.xlu1 %1249 }
 0x19a   :  { %v2588_v60 = vadd.f32 %v1250_v44, %v1239_v57  ;;  %v2590_v19 = vadd.f32 %v1250_v44, %v1240_v15  ;;  %v2592_v31 = vadd.f32 %v1250_v44, %v1241_v5  ;;  %v2594_v25 = vadd.f32 %v1250_v44, %v1242_v23 }
 0x19c   :  { %v1486_v34 = vmul.f32 %v2592_v31, %v2592_v31  ;;  %v1487_v55 = vmul.f32 %v2594_v25, %v2594_v25  ;;  %v1265_v5 = vmul.f32 %v2588_v60, %v2588_v60  ;;  %v1266_v23 = vmul.f32 %v2590_v19, %v2590_v19 }
 0x19e   :  { %v1488_v16 = vsel %vm36_vm0, %v1486_v34, 0.0  ;;  %v1489_v1 = vsel %vm36_vm0, %v1487_v55, 0.0  ;;  %v1267_v56 = vsel %vm36_vm0, %v1265_v5, 0.0  ;;  %v1268_v42 = vsel %vm36_vm0, %v1266_v23, 0.0 }
 0x19f   :  { %v1490_v18 = vadd.f32 %v1489_v1, %v1488_v16  ;;  %v1269_v11 = vadd.f32 %v1268_v42, %v1267_v56 }
 0x1a1   :  { %1491 = vadd.xlane.f32.xlu1 %v1490_v18  ;;  %1270 = vadd.xlane.f32.xlu0 %v1269_v11 }
 0x1a5   :  { %1259 = vadd.xlane.f32.xlu0 %v1258_v59 }
 0x1a9   :  { %1480 = vadd.xlane.f32.xlu0 %v1479_v29 }
 0x22e   :  { %v1492_v28 = vpop.xlane.xlu1 %1491  ;;  %v1271_v53 = vpop.xlane.xlu0 %1270 }
 0x22f   :  { %v1493_v63 = vmax.f32 %v1492_v28, 1e-24  ;;  %v1272_v26 = vmax.f32 %v1271_v53, 1e-24 }
 0x231   :  { %1764 = vrsqrt.f32 %v1493_v63 }
 0x232   :  { %1766 = vrsqrt.f32 %v1272_v26  ;;  %v1260_v13 = vpop.xlane.xlu0 %1259 }
 0x233   :  { %v1261_v45 = vmax.f32 %v1260_v13, 1e-24 }
 0x235   :  { %1768 = vrsqrt.f32 %v1261_v45 }
 0x236   :  { %v1481_v4 = vpop.xlane.xlu0 %1480 }
 0x237   :  { %v1482_v36 = vmax.f32 %v1481_v4, 1e-24 }
 0x239   :  { %1770 = vrsqrt.f32 %v1482_v36 }
 0x23b   :  { %v1765_v32 = vpop.eup %1764 }
 0x23c   :  { %v1767_v57 = vpop.eup %1766  ;;  %v1495_v15 = vmul.f32 %v1765_v32, %v2592_v31  ;;  %v1496_v52 = vmul.f32 %v1765_v32, %v2594_v25 }
 0x23d   :  { %v1274_v48 = vmul.f32 %v1767_v57, %v2588_v60  ;;  %v1275_v8 = vmul.f32 %v1767_v57, %v2590_v19 }
 0x23e   :  { %v1515_v17 = vrot.slane %v1495_v15, %v2800_v51  ;;  %v1519_v10 = vrot.slane %v1496_v52, %v2800_v51  ;;  %v1500_v33 = vrot.slane %v1495_v15, %v2801_v24  ;;  %v1504_v30 = vrot.slane %v1496_v52, %v2801_v24 }
 0x23f   :  { %v1769_v43 = vpop.eup %1768  ;;  %v1294_v21 = vrot.slane %v1274_v48, %v2800_v51  ;;  %v1298_v61 = vrot.slane %v1275_v8, %v2800_v51  ;;  %v1279_v12 = vrot.slane %v1274_v48, %v2801_v24  ;;  %v1283_v39 = vrot.slane %v1275_v8, %v2801_v24 }
 0x240   :  { %v1263_v62 = vmul.f32 %v1769_v43, %v1245_v27  ;;  %v1264_v40 = vmul.f32 %v1769_v43, %v1246_v22  ;;  %v1530_v0 = vrot.slane %v1495_v15, %v2016_v46  ;;  %v1534_v14 = vrot.slane %v1496_v52, %v2016_v46 }
 0x241   :  { %v1309_v27 = vrot.slane %v1274_v48, %v2016_v46  ;;  %v1313_v22 = vrot.slane %v1275_v8, %v2016_v46  ;;  %v1545_v34 = vrot.slane %v1495_v15, %v2018_v41  ;;  %v1549_v55 = vrot.slane %v1496_v52, %v2018_v41 }
 0x242   :  { %v1299_v54 = vmul.f32 %v1294_v21, %v1263_v62  ;;  %v1300_v37 = vmul.f32 %v1298_v61, %v1264_v40  ;;  %v1284_v44 = vmul.f32 %v1279_v12, %v1263_v62  ;;  %v1285_v7 = vmul.f32 %v1283_v39, %v1264_v40 }
 0x243   :  { %v1771_v9 = vpop.eup %1770  ;;  %v1314_v11 = vmul.f32 %v1309_v27, %v1263_v62  ;;  %v1315_v6 = vmul.f32 %v1313_v22, %v1264_v40  ;;  %v1324_v53 = vrot.slane %v1274_v48, %v2018_v41  ;;  %v1328_v45 = vrot.slane %v1275_v8, %v2018_v41 }
 0x244   :  { %v1484_v5 = vmul.f32 %v1771_v9, %v2597_v20  ;;  %v1485_v23 = vmul.f32 %v1771_v9, %v2600_v47  ;;  %v1301_v16 = vsel %vm36_vm0, %v1299_v54, 0.0  ;;  %v1302_v1 = vsel %vm36_vm0, %v1300_v37, 0.0 }
 0x245   :  { %v1303_v56 = vadd.f32 %v1302_v1, %v1301_v16  ;;  %v1286_v42 = vsel %vm36_vm0, %v1284_v44, 0.0  ;;  %v1287_v18 = vsel %vm36_vm0, %v1285_v7, 0.0  ;;  %v1316_v15 = vsel %vm36_vm0, %v1314_v11, 0.0 }
 0x246   :  { %v1288_v58 = vadd.f32 %v1287_v18, %v1286_v42  ;;  %v1520_v3 = vmul.f32 %v1515_v17, %v1484_v5  ;;  %v1521_v49 = vmul.f32 %v1519_v10, %v1485_v23  ;;  %v1505_v50 = vmul.f32 %v1500_v33, %v1484_v5 }
 0x247   :  { %1304 = vadd.xlane.f32.xlu0 %v1303_v56  ;;  %v1506_v59 = vmul.f32 %v1504_v30, %v1485_v23  ;;  %v1535_v38 = vmul.f32 %v1530_v0, %v1484_v5  ;;  %v1536_v20 = vmul.f32 %v1534_v14, %v1485_v23  ;;  %v1550_v32 = vmul.f32 %v1545_v34, %v1484_v5 }
 0x248   :  { %1289 = vadd.xlane.f32.xlu1 %v1288_v58  ;;  %v1522_v47 = vsel %vm1476_vm9, %v1520_v3, 0.0  ;;  %v1523_v29 = vsel %vm1476_vm9, %v1521_v49, 0.0  ;;  %v1507_v28 = vsel %vm1476_vm9, %v1505_v50, 0.0  ;;  %v1551_v57 = vmul.f32 %v1549_v55, %v1485_v23 }
 0x249   :  { %v1524_v63 = vadd.f32 %v1523_v29, %v1522_v47  ;;  %v1508_v26 = vsel %vm1476_vm9, %v1506_v59, 0.0  ;;  %v1537_v13 = vsel %vm1476_vm9, %v1535_v38, 0.0  ;;  %v1538_v36 = vsel %vm1476_vm9, %v1536_v20, 0.0 }
 0x24a   :  { %v1509_v4 = vadd.f32 %v1508_v26, %v1507_v28  ;;  %v1317_v52 = vsel %vm36_vm0, %v1315_v6, 0.0  ;;  %v1329_v43 = vmul.f32 %v1324_v53, %v1263_v62  ;;  %v1330_v21 = vmul.f32 %v1328_v45, %v1264_v40  ;;  %v28_v62 = vld [vmem:[%s2751_s2 + $0x28] sm:$0xf] }
 0x24b   :  { %1525 = vadd.xlane.f32.xlu0 %v1524_v63  ;;  %v1539_v48 = vadd.f32 %v1538_v36, %v1537_v13  ;;  %v1318_v61 = vadd.f32 %v1317_v52, %v1316_v15  ;;  %v1552_v17 = vsel %vm1476_vm9, %v1550_v32, 0.0  ;;  %v1553_v10 = vsel %vm1476_vm9, %v1551_v57, 0.0 }
 0x24c   :  { %1510 = vadd.xlane.f32.xlu1 %v1509_v4  ;;  %v1331_v8 = vsel %vm36_vm0, %v1329_v43, 0.0  ;;  %v1332_v12 = vsel %vm36_vm0, %v1330_v21, 0.0  ;;  %v1554_v39 = vadd.f32 %v1553_v10, %v1552_v17  ;;  %v2802_v21 = vld [vmem:[#allocation6_spill] sm:$0xff]  ;;  %v2803_v17 = vld [vmem:[#allocation4_spill] sm:$0xff] }
 0x24d   :  { %v1333_v33 = vadd.f32 %v1332_v12, %v1331_v8  ;;  %v1370_v10 = vrot.slane %v2588_v60, %v2803_v17  ;;  %v1374_v8 = vrot.slane %v2590_v19, %v2803_v17  ;;  %v1580_v12 = vrot.slane %v2592_v31, %v2802_v21 }
 0x24f   :  { %1540 = vadd.xlane.f32.xlu0 %v1539_v48  ;;  %v1359_v48 = vrot.slane %v2588_v60, %v2802_v21 }
 0x250   :  { %1319 = vadd.xlane.f32.xlu1 %v1318_v61  ;;  %v1363_v61 = vrot.slane %v2590_v19, %v2802_v21 }
 0x253   :  { %1555 = vadd.xlane.f32.xlu0 %v1554_v39  ;;  %v1584_v39 = vrot.slane %v2594_v25, %v2802_v21 }
 0x254   :  { %1334 = vadd.xlane.f32.xlu1 %v1333_v33 }
 0x265   :  { %1453 = vperm.xlu1 %1740, %v28_v62   ;;  %v1591_v62 = vrot.slane %v2592_v31, %v2803_v17 }
 0x2d4   :  { %v1305_v40 = vpop.xlane.xlu0 %1304 }
 0x2d5   :  { %v1290_v30 = vpop.xlane.xlu1 %1289 }
 0x2d6   :  { %v1336_v7 = vmax.f32 %v1290_v30, %v1305_v40 }
 0x2d8   :  { %v1526_v0 = vpop.xlane.xlu0 %1525 }
 0x2d9   :  { %v1511_v14 = vpop.xlane.xlu1 %1510 }
 0x2da   :  { %v1557_v37 = vmax.f32 %v1511_v14, %v1526_v0 }
 0x2dc   :  { %v1541_v54 = vpop.xlane.xlu0 %1540 }
 0x2dd   :  { %v1320_v44 = vpop.xlane.xlu1 %1319  ;;  %v1558_v9 = vmax.f32 %v1557_v37, %v1541_v54 }
 0x2de   :  { %v1337_v27 = vmax.f32 %v1336_v7, %v1320_v44  ;;  %v1400_v7 = vrot.slane %v2590_v19, %v2050_v35 }
 0x2e0   :  { %v1556_v22 = vpop.xlane.xlu0 %1555 }
 0x2e1   :  { %v1335_v34 = vpop.xlane.xlu1 %1334  ;;  %v1559_v55 = vmax.f32 %v1558_v9, %v1556_v22 }
 0x2e2   :  { %v1338_v5 = vmax.f32 %v1337_v27, %v1335_v34  ;;  %v1604_v27 = vrot.slane %v2592_v31, %v2052_v2 }
 0x2e3   :  { %v1560_v23 = vsub.f32 %v1511_v14, %v1559_v55  ;;  %v1563_v42 = vsub.f32 %v1526_v0, %v1559_v55  ;;  %v1566_v49 = vsub.f32 %v1541_v54, %v1559_v55  ;;  %v1569_v38 = vsub.f32 %v1556_v22, %v1559_v55 }
 0x2e4   :  { %v1339_v16 = vsub.f32 %v1290_v30, %v1338_v5  ;;  %v1342_v1 = vsub.f32 %v1305_v40, %v1338_v5  ;;  %v1345_v56 = vsub.f32 %v1320_v44, %v1338_v5  ;;  %v1348_v18 = vsub.f32 %v1335_v34, %v1338_v5 }
 0x2e5   :  { %v1561_v3 = vmul.f32 1.442695, %v1560_v23  ;;  %v1564_v59 = vmul.f32 1.442695, %v1563_v42  ;;  %v1567_v6 = vmul.f32 1.442695, %v1566_v49  ;;  %v1595_v40 = vrot.slane %v2594_v25, %v2803_v17  ;;  %v1454_v49 = vpop.permute.xlu1 %1453 }
 0x2e6   :  { %v1340_v11 = vmul.f32 1.442695, %v1339_v16  ;;  %v1343_v58 = vmul.f32 1.442695, %v1342_v1  ;;  %v1346_v50 = vmul.f32 1.442695, %v1345_v56  ;;  %v1383_v30 = vrot.slane %v2588_v60, %v2052_v2 }
 0x2e7   :  { %v1349_v20 = vmul.f32 1.442695, %v1348_v18  ;;  %v1570_v47 = vmul.f32 1.442695, %v1569_v38  ;;  %v1387_v0 = vrot.slane %v2590_v19, %v2052_v2  ;;  %v1396_v14 = vrot.slane %v2588_v60, %v2050_v35 }
 0x2e8   :  { %1772 = vpow2.f32 %v1340_v11  ;;  %v1608_v22 = vrot.slane %v2594_v25, %v2052_v2  ;;  %v1617_v56 = vrot.slane %v2592_v31, %v2050_v35  ;;  %v1621_v19 = vrot.slane %v2594_v25, %v2050_v35 }
 0x2e9   :  { %1774 = vpow2.f32 %v1343_v58 }
 0x2ea   :  { %1776 = vpow2.f32 %v1561_v3  ;;  %v2698_v3 = vld [vmem:[%s2754_s1] sm:$0xff] }
 0x2eb   :  { %1778 = vpow2.f32 %v1346_v50 }
 0x2ec   :  { %1780 = vpow2.f32 %v1564_v59 }
 0x2ed   :  { %1782 = vpow2.f32 %v1349_v20 }
 0x2ee   :  { %1784 = vpow2.f32 %v1567_v6 }
 0x2ef   :  { %1786 = vpow2.f32 %v1570_v47 }
 0x2f2   :  { %v1773_v29 = vpop.eup %1772 }
 0x2f3   :  { %v1775_v28 = vpop.eup %1774 }
 0x2f4   :  { %v1777_v53 = vpop.eup %1776  ;;  %v1351_v63 = vadd.f32 %v1775_v28, %v1773_v29 }
 0x2f5   :  { %v1779_v26 = vpop.eup %1778 }
 0x2f6   :  { %v1781_v13 = vpop.eup %1780  ;;  %v1352_v45 = vadd.f32 %v1779_v26, %v1351_v63  ;;  %v2702_v63 = vrot.slane %v1454_v49, 4 }
 0x2f7   :  { %v1783_v4 = vpop.eup %1782  ;;  %v1572_v36 = vadd.f32 %v1781_v13, %v1777_v53 }
 0x2f8   :  { %v1785_v32 = vpop.eup %1784  ;;  %v1353_v57 = vadd.f32 %v1783_v4, %v1352_v45 }
 0x2f9   :  { %v1573_v15 = vadd.f32 %v1785_v32, %v1572_v36  ;;  %v1787_v52 = vpop.eup %1786 }
 0x2fa   :  { %1788 = vrcp.f32 %v1353_v57 }
 0x2fb   :  { %v1574_v43 = vadd.f32 %v1787_v52, %v1573_v15 }
 0x2fd   :  { %1790 = vrcp.f32 %v1574_v43 }
 0x304   :  { %v1789_v33 = vpop.eup %1788 }
 0x305   :  { %v1355_v54 = vmul.f32 %v1789_v33, %v1773_v29  ;;  %v1366_v37 = vmul.f32 %v1789_v33, %v1775_v28  ;;  %v1379_v44 = vmul.f32 %v1789_v33, %v1779_v26  ;;  %v1392_v9 = vmul.f32 %v1789_v33, %v1783_v4  ;;  %v2804_v33 = vld [vmem:[#allocation7_spill] sm:$0xff] }
 0x307   :  { %v1791_v34 = vpop.eup %1790  ;;  %v1364_v55 = vmul.f32 %v1359_v48, %v1355_v54  ;;  %v1365_v5 = vmul.f32 %v1363_v61, %v1355_v54  ;;  %v1375_v23 = vmul.f32 %v1370_v10, %v1366_v37  ;;  %v1376_v16 = vmul.f32 %v1374_v8, %v1366_v37  ;;  %v2806_v37 = vld [vmem:[#allocation9_spill] sm:$0xff] }
 0x308   :  { %v1388_v1 = vmul.f32 %v1383_v30, %v1379_v44  ;;  %v1389_v60 = vmul.f32 %v1387_v0, %v1379_v44  ;;  %v1576_v11 = vmul.f32 %v1791_v34, %v1777_v53  ;;  %v1587_v58 = vmul.f32 %v1791_v34, %v1781_v13  ;;  %v2805_v30 = vld [vmem:[#allocation8_spill] sm:$0xff] }
 0x309   :  { %v1377_v42 = vadd.f32 %v1375_v23, %v1364_v55  ;;  %v1378_v18 = vadd.f32 %v1376_v16, %v1365_v5  ;;  %v1401_v50 = vmul.f32 %v1396_v14, %v1392_v9  ;;  %v1402_v59 = vmul.f32 %v1400_v7, %v1392_v9 }
 0x30a   :  { %v1600_v38 = vmul.f32 %v1791_v34, %v1785_v32  ;;  %v1613_v20 = vmul.f32 %v1791_v34, %v1787_v52  ;;  %v1585_v31 = vmul.f32 %v1580_v12, %v1576_v11  ;;  %v1586_v29 = vmul.f32 %v1584_v39, %v1576_v11 }
 0x30b   :  { %v1390_v6 = vadd.f32 %v1388_v1, %v1377_v42  ;;  %v1391_v47 = vadd.f32 %v1389_v60, %v1378_v18  ;;  %v1596_v28 = vmul.f32 %v1591_v62, %v1587_v58  ;;  %v1597_v25 = vmul.f32 %v1595_v40, %v1587_v58  ;;  %v2807_v1 = vld [vmem:[#allocation11_spill] sm:$0xff] }
 0x30c   :  { %v1461_v53 = vcombine.low %v2698_v3, %v2698_v3  ;;  %v1609_v45 = vmul.f32 %v1604_v27, %v1600_v38  ;;  %v1610_v4 = vmul.f32 %v1608_v22, %v1600_v38  ;;  %v1622_v15 = vmul.f32 %v1617_v56, %v1613_v20 }
 0x30d   :  { %v1403_v26 = vadd.f32 %v1401_v50, %v1390_v6  ;;  %v1404_v13 = vadd.f32 %v1402_v59, %v1391_v47  ;;  %v1598_v36 = vadd.f32 %v1596_v28, %v1585_v31  ;;  %v1599_v57 = vadd.f32 %v1597_v25, %v1586_v29  ;;  %v1692_v29 = vld [vmem:[%s2754_s1 + $0x8] sm:$0xff] }
 0x30e   :  { %v1623_v32 = vmul.f32 %v1621_v19, %v1613_v20 }
 0x30f   :  { %v1408_v52 = vrot.slane %v1403_v26, %v2801_v24  ;;  %v1412_v43 = vrot.slane %v1404_v13, %v2801_v24  ;;  %v1418_v48 = vrot.slane %v1403_v26, %v2800_v51  ;;  %v1422_v61 = vrot.slane %v1404_v13, %v2800_v51 }
 0x310   :  { %v1611_v10 = vadd.f32 %v1609_v45, %v1598_v36  ;;  %v1612_v8 = vadd.f32 %v1610_v4, %v1599_v57  ;;  %v1430_v12 = vrot.slane %v1403_v26, %v2016_v46  ;;  %v1434_v39 = vrot.slane %v1404_v13, %v2016_v46 }
 0x311   :  { %v1413_v62 = vmul.f32 %v1408_v52, %v2804_v33  ;;  %v1414_v40 = vmul.f32 %v1412_v43, %v2804_v33  ;;  %v1423_v0 = vmul.f32 %v1418_v48, %v2805_v30  ;;  %v1424_v14 = vmul.f32 %v1422_v61, %v2805_v30 }
 0x312   :  { %v1624_v54 = vadd.f32 %v1622_v15, %v1611_v10  ;;  %v1625_v24 = vadd.f32 %v1623_v32, %v1612_v8  ;;  %v1435_v44 = vmul.f32 %v1430_v12, %v2806_v37  ;;  %v1436_v51 = vmul.f32 %v1434_v39, %v2806_v37 }
 0x313   :  { %v1425_v7 = vadd.f32 %v1423_v0, %v1413_v62  ;;  %v1426_v9 = vadd.f32 %v1424_v14, %v1414_v40  ;;  %v1442_v27 = vrot.slane %v1403_v26, %v2018_v41  ;;  %v1446_v46 = vrot.slane %v1404_v13, %v2018_v41 }
 0x314   :  { %v1629_v22 = vrot.slane %v1624_v54, %v2802_v21  ;;  %v1633_v34 = vrot.slane %v1625_v24, %v2802_v21  ;;  %v1639_v55 = vrot.slane %v1624_v54, %v2803_v17  ;;  %v1643_v5 = vrot.slane %v1625_v24, %v2803_v17 }
 0x315   :  { %v1437_v23 = vadd.f32 %v1435_v44, %v1425_v7  ;;  %v1438_v16 = vadd.f32 %v1436_v51, %v1426_v9  ;;  %v1447_v60 = vmul.f32 %v1442_v27, %v2807_v1  ;;  %v1448_v56 = vmul.f32 %v1446_v46, %v2807_v1 }
 0x316   :  { %v1634_v19 = vmul.f32 %v1629_v22, %v2804_v33  ;;  %v1635_v42 = vmul.f32 %v1633_v34, %v2804_v33  ;;  %v1644_v41 = vmul.f32 %v1639_v55, %v2805_v30  ;;  %v1645_v18 = vmul.f32 %v1643_v5, %v2805_v30 }
 0x317   :  { %v1449_v11 = vadd.f32 %v1447_v60, %v1437_v23  ;;  %v1450_v21 = vadd.f32 %v1448_v56, %v1438_v16  ;;  %v1651_v58 = vrot.slane %v1624_v54, %v2052_v2  ;;  %v1655_v17 = vrot.slane %v1625_v24, %v2052_v2 }
 0x318   :  { %v1646_v49 = vadd.f32 %v1644_v41, %v1634_v19  ;;  %v1647_v50 = vadd.f32 %v1645_v18, %v1635_v42  ;;  %v1663_v59 = vrot.slane %v1624_v54, %v2050_v35  ;;  %v1667_v38 = vrot.slane %v1625_v24, %v2050_v35 }
 0x319   :  { %v1457_v20 = vadd.f32 %v2702_v63, %v1449_v11  ;;  %v1458_v6 = vadd.f32 %v2702_v63, %v1450_v21  ;;  %v1656_v47 = vmul.f32 %v1651_v58, %v2806_v37  ;;  %v1657_v31 = vmul.f32 %v1655_v17, %v2806_v37 }
 0x31a   :  { %v1668_v2 = vmul.f32 %v1663_v59, %v2807_v1  ;;  %v1669_v28 = vmul.f32 %v1667_v38, %v2807_v1  ;;  %v1676_v45 = vcombine.low %v1692_v29, %v1692_v29 }
 0x31b   :  { %v1463_v25 = vadd.f32 %v1461_v53, %v1457_v20  ;;  %v1464_v26 = vadd.f32 %v2698_v3, %v1458_v6  ;;  %v1658_v35 = vadd.f32 %v1656_v47, %v1646_v49  ;;  %v1659_v13 = vadd.f32 %v1657_v31, %v1647_v50 }
 0x31d   :  { %v1467_v4 = vcombine.high %v1463_v25, %v1464_v26  ;;  %v1670_v36 = vadd.f32 %v1668_v2, %v1658_v35  ;;  %v1671_v57 = vadd.f32 %v1669_v28, %v1659_v13 }
 0x31f   :  { %1469 = vst [vmem:[%s2756_s6] sm:$0xff] %v1467_v4  ;;  %v1672_v15 = vadd.f32 %v1670_v36, %v2702_v63  ;;  %v1673_v32 = vadd.f32 %v1671_v57, %v2702_v63 }
 0x321   :  { %v1678_v52 = vadd.f32 %v1676_v45, %v1672_v15  ;;  %v1679_v43 = vadd.f32 %v1692_v29, %v1673_v32 }
 0x323   :  { %v1682_v48 = vcombine.high %v1678_v52, %v1679_v43 }
 0x325   :  { %1693 = vst [vmem:[%s2756_s6 + $0x8] sm:$0xff] %v1682_v48 }

</bundles_post_ra>
